<compile_context>
chip_gen: v7x
topology: tpu7x:2x2x1
jax: 0.10.0
libtpu: 0.0.40
codegen_flags: <defaults>
</compile_context>

<pallas_src>
import functools

import jax
import jax.numpy as jnp
from jax.experimental import pallas as pl
from jax.experimental.pallas import tpu as pltpu

# ----------------------------- matcher cost weights (DETR defaults) -------------
COST_CLASS = 1.0
COST_BBOX = 5.0
COST_GIOU = 2.0


# ================================ Pallas kernels ================================

def matcher_cost_kernel(logits_t_ref, boxes_t_ref, labels_ref, tboxes_ref, cost_ref):
    """Pairwise matching cost for the whole batch in one grid step.

    logits_t_ref: [B, C1, Qp]  classes on sublanes, (padded) queries on lanes
    boxes_t_ref : [B, 4, Qp]   (cx, cy, w, h) on sublanes, queries on lanes
    labels_ref  : [B, T, 1]    int32 target labels
    tboxes_ref  : [B, T, 4]    target boxes (cx, cy, w, h)
    cost_ref    : [B, T, Qp]   output matching cost (lane-dense over queries)
    """
    B, C1, _ = logits_t_ref.shape
    T = labels_ref.shape[1]

    for b in range(B):  # B is small & static -> unrolled; all work stays 2-D
        lg = logits_t_ref[b]                                   # [C1, Qp]
        m = jnp.max(lg, axis=0, keepdims=True)                 # [1, Qp]
        e = jnp.exp(lg - m)
        prob = e * pl.reciprocal(jnp.sum(e, axis=0, keepdims=True), approx=True)

        # -prob[label_t, q]; one-hot selector built in-kernel from int labels.
        lab = labels_ref[b]                                    # [T, 1]
        sel = (jax.lax.broadcasted_iota(jnp.int32, (T, C1), 1) == lab
               ).astype(jnp.float32)                           # [T, C1]
        cost_class = -jnp.dot(sel, prob,
                              preferred_element_type=jnp.float32)  # [T, Qp]

        srcT = boxes_t_ref[b]                                  # [4, Qp]
        s_cx, s_cy = srcT[0:1, :], srcT[1:2, :]
        s_w, s_h = srcT[2:3, :], srcT[3:4, :]                  # [1, Qp]
        tgt = tboxes_ref[b]                                    # [T, 4]
        t_cx, t_cy = tgt[:, 0:1], tgt[:, 1:2]
        t_w, t_h = tgt[:, 2:3], tgt[:, 3:4]                    # [T, 1]

        # pairwise L1 cost: [T,1] x [1,Qp] broadcasts
        cost_bbox = (jnp.abs(t_cx - s_cx) + jnp.abs(t_cy - s_cy)
                     + jnp.abs(t_w - s_w) + jnp.abs(t_h - s_h))  # [T, Qp]

        # cxcywh -> xyxy
        s_x1, s_y1 = s_cx - 0.5 * s_w, s_cy - 0.5 * s_h
        s_x2, s_y2 = s_cx + 0.5 * s_w, s_cy + 0.5 * s_h
        t_x1, t_y1 = t_cx - 0.5 * t_w, t_cy - 0.5 * t_h
        t_x2, t_y2 = t_cx + 0.5 * t_w, t_cy + 0.5 * t_h

        area_s = (s_x2 - s_x1) * (s_y2 - s_y1)                 # [1, Qp]
        area_t = (t_x2 - t_x1) * (t_y2 - t_y1)                 # [T, 1]
        inter_w = jnp.maximum(jnp.minimum(s_x2, t_x2) - jnp.maximum(s_x1, t_x1), 0.0)
        inter_h = jnp.maximum(jnp.minimum(s_y2, t_y2) - jnp.maximum(s_y1, t_y1), 0.0)
        inter = inter_w * inter_h                              # [T, Qp]
        union = area_s + area_t - inter
        iou = inter * pl.reciprocal(union, approx=True)
        c_w = jnp.maximum(s_x2, t_x2) - jnp.minimum(s_x1, t_x1)
        c_h = jnp.maximum(s_y2, t_y2) - jnp.minimum(s_y1, t_y1)
        area_c = c_w * c_h
        giou = iou - (area_c - union) * pl.reciprocal(area_c, approx=True)

        cost_ref[b] = (COST_BBOX * cost_bbox
                       + COST_CLASS * cost_class
                       + COST_GIOU * (-giou))


def losses_kernel(logits_t_ref, tc_ref, tlen_ref, srcb_ref, tgtb_ref,
                  mlog_ref, mlab_ref, nb_ref, out_ref, *, num_classes, eos_coef):
    """All SetCriterion losses for one forward call.

    logits_t_ref: [B, C1, Q]  classes on sublanes, queries on lanes
    tc_ref      : [B, 1, Q]   int32 target_classes (after matching)
    tlen_ref    : [B, 1, 1]   f32 number of targets per image
    srcb_ref    : [4, M]      matched predicted boxes (coords on sublanes)
    tgtb_ref    : [4, M]      matched target boxes
    mlog_ref    : [C1, M]     matched predicted logits
    mlab_ref    : [1, M]      int32 matched target labels
    nb_ref      : [1, 1]      f32 num_boxes normalizer
    out_ref     : [1, 8] = [loss_ce, class_error, cardinality_error,
                            loss_bbox, loss_giou, 0, 0, 0]
    """
    B, C1, Q = logits_t_ref.shape

    ce_num = jnp.zeros((1, 1), jnp.float32)
    ce_den = jnp.zeros((1, 1), jnp.float32)
    card_acc = jnp.zeros((1, 1), jnp.float32)

    for b in range(B):
        lg = logits_t_ref[b]                                   # [C1, Q]
        tc = tc_ref[b]                                         # [1, Q] int32

        # ---- weighted cross entropy (F.cross_entropy with class weights) ----
        mx = jnp.max(lg, axis=0, keepdims=True)                # [1, Q]
        lse = mx + jnp.log(jnp.sum(jnp.exp(lg - mx), axis=0, keepdims=True))
        onehot = (jax.lax.broadcasted_iota(jnp.int32, (C1, Q), 0) == tc
                  ).astype(jnp.float32)                        # [C1, Q]
        logp_at = jnp.sum(onehot * (lg - lse), axis=0, keepdims=True)  # [1, Q]
        w = jnp.where(tc == num_classes, eos_coef, 1.0)        # [1, Q]
        ce_num = ce_num + jnp.sum(w * (-logp_at), axis=1, keepdims=True)
        ce_den = ce_den + jnp.sum(w, axis=1, keepdims=True)

        # ---- cardinality: argmax != no-object  <=>  max(foreground) >= no-object
        max_fg = jnp.max(lg[:C1 - 1, :], axis=0, keepdims=True)
        is_obj = (max_fg >= lg[C1 - 1:C1, :]).astype(jnp.float32)   # [1, Q]
        card_pred = jnp.sum(is_obj, axis=1, keepdims=True)          # [1, 1]
        card_acc = card_acc + jnp.abs(card_pred - tlen_ref[b])

    loss_ce = ce_num * pl.reciprocal(ce_den, approx=True)
    card_err = card_acc * (1.0 / B)

    # ---- class_error (100 - top-1 accuracy on matched predictions) ----
    ml = mlog_ref[...]                                         # [C1, M]
    mlab = mlab_ref[...]                                       # [1, M]
    M = ml.shape[1]
    msel = (jax.lax.broadcasted_iota(jnp.int32, (C1, M), 0) == mlab
            ).astype(jnp.float32)
    at_lab = jnp.sum(msel * ml, axis=0, keepdims=True)         # [1, M]
    mmax = jnp.max(ml, axis=0, keepdims=True)
    correct = (at_lab >= mmax).astype(jnp.float32)
    class_error = 100.0 - (100.0 / M) * jnp.sum(correct, axis=1, keepdims=True)

    # ---- box losses (matched pairs), coords on sublanes, M on lanes ----
    inv_nb = pl.reciprocal(nb_ref[...], approx=True)           # [1, 1]
    src = srcb_ref[...]                                        # [4, M]
    tgt = tgtb_ref[...]                                        # [4, M]
    l1 = jnp.abs(src - tgt)
    loss_bbox = jnp.sum(jnp.sum(l1, axis=0, keepdims=True),
                        axis=1, keepdims=True) * inv_nb        # (1,1)

    s_x1 = src[0:1, :] - 0.5 * src[2:3, :]
    s_y1 = src[1:2, :] - 0.5 * src[3:4, :]
    s_x2 = src[0:1, :] + 0.5 * src[2:3, :]
    s_y2 = src[1:2, :] + 0.5 * src[3:4, :]
    t_x1 = tgt[0:1, :] - 0.5 * tgt[2:3, :]
    t_y1 = tgt[1:2, :] - 0.5 * tgt[3:4, :]
    t_x2 = tgt[0:1, :] + 0.5 * tgt[2:3, :]
    t_y2 = tgt[1:2, :] + 0.5 * tgt[3:4, :]

    area_s = (s_x2 - s_x1) * (s_y2 - s_y1)
    area_t = (t_x2 - t_x1) * (t_y2 - t_y1)
    inter_w = jnp.maximum(jnp.minimum(s_x2, t_x2) - jnp.maximum(s_x1, t_x1), 0.0)
    inter_h = jnp.maximum(jnp.minimum(s_y2, t_y2) - jnp.maximum(s_y1, t_y1), 0.0)
    inter = inter_w * inter_h
    union = area_s + area_t - inter
    iou = inter * pl.reciprocal(union, approx=True)
    c_w = jnp.maximum(s_x2, t_x2) - jnp.minimum(s_x1, t_x1)
    c_h = jnp.maximum(s_y2, t_y2) - jnp.minimum(s_y1, t_y1)
    area_c = c_w * c_h
    giou = iou - (area_c - union) * pl.reciprocal(area_c, approx=True)  # [1, M]
    loss_giou = jnp.sum(1.0 - giou, axis=1, keepdims=True) * inv_nb

    lane = jax.lax.broadcasted_iota(jnp.int32, (1, 8), 1)
    out_ref[...] = (jnp.where(lane == 0, loss_ce, 0.0)
                    + jnp.where(lane == 1, class_error, 0.0)
                    + jnp.where(lane == 2, card_err, 0.0)
                    + jnp.where(lane == 3, loss_bbox, 0.0)
                    + jnp.where(lane == 4, loss_giou, 0.0))


# ================================ wrapper ========================================

class SetCriterionPallas:
    """JAX/Pallas re-implementation of DETR's SetCriterion forward pass."""

    def __init__(self, num_classes, eos_coef=0.1,
                 losses=('labels', 'cardinality', 'boxes')):
        self.num_classes = int(num_classes)
        self.eos_coef = float(eos_coef)
        self.losses = tuple(losses)
        # 'empty_weight' buffer kept for parity with register_buffer(); the
        # kernels derive class weights from (num_classes, eos_coef) directly.
        self.empty_weight = jnp.ones((num_classes + 1,), jnp.float32).at[-1].set(eos_coef)
        self._forward = jax.jit(self._forward_impl)

    # ---------------- matcher: Pallas cost matrix + greedy assignment ----------
    def _match(self, pred_logits, pred_boxes, tgt_labels, tgt_boxes):
        B, Q, C1 = pred_logits.shape
        T = tgt_labels.shape[1]
        Qp = ((Q + 127) // 128) * 128                    # lane-dense query axis

        logits_t = jnp.transpose(pred_logits, (0, 2, 1))            # [B, C1, Q]
        logits_tp = jnp.pad(logits_t, ((0, 0), (0, 0), (0, Qp - Q)))
        # pad with a benign box (cx=cy=w=h=0.5) to keep GIoU finite on padding
        boxes_tp = jnp.pad(jnp.transpose(pred_boxes, (0, 2, 1)),
                           ((0, 0), (0, 0), (0, Qp - Q)), constant_values=0.5)
        labels3 = tgt_labels.astype(jnp.int32)[:, :, None]          # [B, T, 1]

        vmem = pl.BlockSpec(memory_space=pltpu.MemorySpace.VMEM)
        cost = pl.pallas_call(
            matcher_cost_kernel,
            out_shape=jax.ShapeDtypeStruct((B, T, Qp), jnp.float32),
            in_specs=[vmem] * 4,
            out_specs=vmem,
            compiler_params=pltpu.CompilerParams(vmem_limit_bytes=32 * 1024 * 1024),
        )(logits_tp, boxes_tp, labels3, tgt_boxes)

        # greedy column-wise assignment (Hungarian approximation; see TODO)
        q_iota = jnp.arange(Qp, dtype=jnp.int32)[None, :]           # [1, Qp]
        valid = q_iota < Q
        BIG = jnp.float32(1e30)

        def body(t, carry):
            taken, idx = carry                                      # [B,Qp], [B,T]
            col = jax.lax.dynamic_index_in_dim(cost, t, axis=1, keepdims=False)
            col = jnp.where(valid & jnp.logical_not(taken), col, BIG)
            q = jnp.argmin(col, axis=-1).astype(jnp.int32)          # [B]
            taken = taken | (q_iota == q[:, None])
            idx = jax.lax.dynamic_update_slice(idx, q[:, None], (0, t))
            return taken, idx

        taken0 = jnp.zeros((B, Qp), jnp.bool_)
        idx0 = jnp.zeros((B, T), jnp.int32)
        _, src_idx = jax.lax.fori_loop(0, T, body, (taken0, idx0))
        return src_idx, logits_t

    # ---------------- forward --------------------------------------------------
    def _forward_impl(self, pred_logits, pred_boxes, tgt_labels, tgt_boxes):
        B, Q, C1 = pred_logits.shape
        T = tgt_labels.shape[1]
        M = B * T

        src_idx, logits_t = self._match(pred_logits, pred_boxes, tgt_labels, tgt_boxes)
        batch_idx = jnp.arange(B, dtype=jnp.int32)[:, None]          # [B, 1]

        # _get_src_permutation_idx + target_classes scatter (glue, fused in jit)
        target_classes = jnp.full((B, Q), self.num_classes, jnp.int32)
        target_classes = target_classes.at[batch_idx, src_idx].set(
            tgt_labels.astype(jnp.int32))
        tc3 = target_classes[:, None, :]                             # [B, 1, Q]

        src_boxes_t = jnp.transpose(pred_boxes[batch_idx, src_idx].reshape(M, 4))   # [4, M]
        tgt_boxes_t = jnp.transpose(tgt_boxes.reshape(M, 4))                        # [4, M]
        mlog_t = jnp.transpose(pred_logits[batch_idx, src_idx].reshape(M, C1))      # [C1, M]
        mlab = tgt_labels.reshape(1, M).astype(jnp.int32)                           # [1, M]

        # NOTE: assumes every image carries exactly T real targets (no padding).
        tlen = jnp.full((B, 1, 1), float(T), jnp.float32)
        num_boxes = jnp.full((1, 1), max(float(M), 1.0), jnp.float32)  # clamp(min=1)

        vmem = pl.BlockSpec(memory_space=pltpu.MemorySpace.VMEM)
        out = pl.pallas_call(
            functools.partial(losses_kernel,
                              num_classes=self.num_classes,
                              eos_coef=self.eos_coef),
            out_shape=jax.ShapeDtypeStruct((1, 8), jnp.float32),
            in_specs=[vmem] * 8,
            out_specs=vmem,
            compiler_params=pltpu.CompilerParams(vmem_limit_bytes=32 * 1024 * 1024),
        )(logits_t, tc3, tlen, src_boxes_t, tgt_boxes_t, mlog_t, mlab, num_boxes)

        losses = {}
        if 'labels' in self.losses:
            losses['loss_ce'] = out[0, 0]
            losses['class_error'] = out[0, 1]
        if 'cardinality' in self.losses:
            losses['cardinality_error'] = out[0, 2]
        if 'boxes' in self.losses:
            losses['loss_bbox'] = out[0, 3]
            losses['loss_giou'] = out[0, 4]
        return losses

    def __call__(self, outputs, targets):
        return self._forward(outputs['pred_logits'], outputs['pred_boxes'],
                             targets['labels'], targets['boxes'])


# ================================ demo ===========================================

if __name__ == "__main__":
    key = jax.random.PRNGKey(0)
    k1, k2, k3, k4, k5 = jax.random.split(key, 5)

    B, Q, NUM_CLASSES, T = 2, 16, 4, 4
    C1 = NUM_CLASSES + 1

    pred_logits = jax.random.normal(k1, (B, Q, C1), jnp.float32)
    pred_boxes = jax.nn.sigmoid(jax.random.normal(k2, (B, Q, 4), jnp.float32))

    tgt_labels = jax.random.randint(k3, (B, T), 0, NUM_CLASSES, jnp.int32)
    tgt_cxcy = 0.25 + 0.5 * jax.random.uniform(k4, (B, T, 2), jnp.float32)
    tgt_wh = 0.10 + 0.2 * jax.random.uniform(k5, (B, T, 2), jnp.float32)
    tgt_boxes = jnp.concatenate([tgt_cxcy, tgt_wh], axis=-1)

    criterion = SetCriterionPallas(num_classes=NUM_CLASSES, eos_coef=0.1,
                                   losses=('labels', 'cardinality', 'boxes'))

    outputs = {'pred_logits': pred_logits, 'pred_boxes': pred_boxes}
    targets = {'labels': tgt_labels, 'boxes': tgt_boxes}

    losses = criterion(outputs, targets)
    losses = jax.block_until_ready(losses)
    print("KERNEL_OK")
</pallas_src>

<mosaic_0001>
module attributes {stable_mosaic.version = 11 : i64} {
  func.func @matcher_cost_kernel(%arg0: memref<2x5x128xf32, #tpu.memory_space<vmem>>, %arg1: memref<2x4x128xf32, #tpu.memory_space<vmem>>, %arg2: memref<2x4x1xi32, #tpu.memory_space<vmem>>, %arg3: memref<2x4x4xf32, #tpu.memory_space<vmem>>, %arg4: memref<2x4x128xf32, #tpu.memory_space<vmem>>) attributes {dimension_semantics = [], scalar_prefetch = 0 : i64, scratch_operands = 0 : i64, tpu.core_type = #tpu.core_type<tc>} {
    %c0 = arith.constant 0 : index
    %c0_0 = arith.constant 0 : index
    %c0_1 = arith.constant 0 : index
    %0 = vector.load %arg0[%c0, %c0_0, %c0_1] : memref<2x5x128xf32, #tpu.memory_space<vmem>>, vector<1x5x128xf32>
    %1 = vector.shape_cast %0 : vector<1x5x128xf32> to vector<5x128xf32>
    %cst = arith.constant dense<0xFF800000> : vector<128xf32>
    %2 = vector.multi_reduction <maximumf>, %1, %cst [0] : vector<5x128xf32> to vector<128xf32>
    %3 = vector.shape_cast %2 : vector<128xf32> to vector<1x128xf32>
    %4 = vector.broadcast %3 : vector<1x128xf32> to vector<5x128xf32>
    %5 = arith.subf %1, %4 : vector<5x128xf32>
    %6 = math.exp %5 : vector<5x128xf32>
    %cst_2 = arith.constant dense<0.000000e+00> : vector<128xf32>
    %7 = vector.multi_reduction <add>, %6, %cst_2 [0] : vector<5x128xf32> to vector<128xf32>
    %8 = vector.shape_cast %7 : vector<128xf32> to vector<1x128xf32>
    %9 = tpu.reciprocal %8 {approx = true} : vector<1x128xf32> -> vector<1x128xf32>
    %10 = vector.broadcast %9 : vector<1x128xf32> to vector<5x128xf32>
    %11 = arith.mulf %6, %10 : vector<5x128xf32>
    %c0_3 = arith.constant 0 : index
    %c0_4 = arith.constant 0 : index
    %c0_5 = arith.constant 0 : index
    %12 = vector.load %arg2[%c0_3, %c0_4, %c0_5] : memref<2x4x1xi32, #tpu.memory_space<vmem>>, vector<1x4x1xi32>
    %13 = vector.shape_cast %12 : vector<1x4x1xi32> to vector<4x1xi32>
    %14 = tpu.iota {dimensions = array<i32: 1>} : vector<4x5xi32>
    %15 = vector.broadcast %13 : vector<4x1xi32> to vector<4x5xi32>
    %16 = arith.cmpi eq, %14, %15 : vector<4x5xi32>
    %17 = arith.extui %16 : vector<4x5xi1> to vector<4x5xi32>
    %18 = arith.sitofp %17 : vector<4x5xi32> to vector<4x5xf32>
    %cst_6 = arith.constant dense<0.000000e+00> : vector<4x128xf32>
    %19 = tpu.matmul %18, %11, %cst_6 {dimension_numbers = #tpu.dot_dimension_numbers<[1], [0], [0], [1], [0, 0, 1, 1], [], []>} : vector<4x5xf32>, vector<5x128xf32>, vector<4x128xf32> -> vector<4x128xf32>
    %cst_7 = arith.constant 0.000000e+00 : f32
    %20 = vector.broadcast %cst_7 : f32 to vector<4x128xf32>
    %21 = arith.subf %20, %19 : vector<4x128xf32>
    %c0_8 = arith.constant 0 : index
    %c0_9 = arith.constant 0 : index
    %c0_10 = arith.constant 0 : index
    %22 = vector.load %arg1[%c0_8, %c0_9, %c0_10] : memref<2x4x128xf32, #tpu.memory_space<vmem>>, vector<1x4x128xf32>
    %23 = vector.shape_cast %22 : vector<1x4x128xf32> to vector<4x128xf32>
    %24 = vector.extract_strided_slice %23 {offsets = [0, 0], sizes = [1, 128], strides = [1, 1]} : vector<4x128xf32> to vector<1x128xf32>
    %25 = vector.extract_strided_slice %23 {offsets = [1, 0], sizes = [1, 128], strides = [1, 1]} : vector<4x128xf32> to vector<1x128xf32>
    %26 = vector.extract_strided_slice %23 {offsets = [2, 0], sizes = [1, 128], strides = [1, 1]} : vector<4x128xf32> to vector<1x128xf32>
    %27 = vector.extract_strided_slice %23 {offsets = [3, 0], sizes = [1, 128], strides = [1, 1]} : vector<4x128xf32> to vector<1x128xf32>
    %c0_11 = arith.constant 0 : index
    %c0_12 = arith.constant 0 : index
    %c0_13 = arith.constant 0 : index
    %28 = vector.load %arg3[%c0_11, %c0_12, %c0_13] : memref<2x4x4xf32, #tpu.memory_space<vmem>>, vector<1x4x4xf32>
    %29 = vector.shape_cast %28 : vector<1x4x4xf32> to vector<4x4xf32>
    %30 = vector.extract_strided_slice %29 {offsets = [0, 0], sizes = [4, 1], strides = [1, 1]} : vector<4x4xf32> to vector<4x1xf32>
    %31 = vector.extract_strided_slice %29 {offsets = [0, 1], sizes = [4, 1], strides = [1, 1]} : vector<4x4xf32> to vector<4x1xf32>
    %32 = vector.extract_strided_slice %29 {offsets = [0, 2], sizes = [4, 1], strides = [1, 1]} : vector<4x4xf32> to vector<4x1xf32>
    %33 = vector.extract_strided_slice %29 {offsets = [0, 3], sizes = [4, 1], strides = [1, 1]} : vector<4x4xf32> to vector<4x1xf32>
    %34 = vector.broadcast %30 : vector<4x1xf32> to vector<4x128xf32>
    %35 = vector.broadcast %24 : vector<1x128xf32> to vector<4x128xf32>
    %36 = arith.subf %34, %35 : vector<4x128xf32>
    %37 = math.absf %36 : vector<4x128xf32>
    %38 = vector.broadcast %31 : vector<4x1xf32> to vector<4x128xf32>
    %39 = vector.broadcast %25 : vector<1x128xf32> to vector<4x128xf32>
    %40 = arith.subf %38, %39 : vector<4x128xf32>
    %41 = math.absf %40 : vector<4x128xf32>
    %42 = arith.addf %37, %41 : vector<4x128xf32>
    %43 = vector.broadcast %32 : vector<4x1xf32> to vector<4x128xf32>
    %44 = vector.broadcast %26 : vector<1x128xf32> to vector<4x128xf32>
    %45 = arith.subf %43, %44 : vector<4x128xf32>
    %46 = math.absf %45 : vector<4x128xf32>
    %47 = arith.addf %42, %46 : vector<4x128xf32>
    %48 = vector.broadcast %33 : vector<4x1xf32> to vector<4x128xf32>
    %49 = vector.broadcast %27 : vector<1x128xf32> to vector<4x128xf32>
    %50 = arith.subf %48, %49 : vector<4x128xf32>
    %51 = math.absf %50 : vector<4x128xf32>
    %52 = arith.addf %47, %51 : vector<4x128xf32>
    %cst_14 = arith.constant 5.000000e-01 : f32
    %53 = vector.broadcast %cst_14 : f32 to vector<1x128xf32>
    %54 = arith.mulf %53, %26 : vector<1x128xf32>
    %55 = arith.subf %24, %54 : vector<1x128xf32>
    %cst_15 = arith.constant 5.000000e-01 : f32
    %56 = vector.broadcast %cst_15 : f32 to vector<1x128xf32>
    %57 = arith.mulf %56, %27 : vector<1x128xf32>
    %58 = arith.subf %25, %57 : vector<1x128xf32>
    %cst_16 = arith.constant 5.000000e-01 : f32
    %59 = vector.broadcast %cst_16 : f32 to vector<1x128xf32>
    %60 = arith.mulf %59, %26 : vector<1x128xf32>
    %61 = arith.addf %24, %60 : vector<1x128xf32>
    %cst_17 = arith.constant 5.000000e-01 : f32
    %62 = vector.broadcast %cst_17 : f32 to vector<1x128xf32>
    %63 = arith.mulf %62, %27 : vector<1x128xf32>
    %64 = arith.addf %25, %63 : vector<1x128xf32>
    %cst_18 = arith.constant 5.000000e-01 : f32
    %65 = vector.broadcast %cst_18 : f32 to vector<4x1xf32>
    %66 = arith.mulf %65, %32 : vector<4x1xf32>
    %67 = arith.subf %30, %66 : vector<4x1xf32>
    %cst_19 = arith.constant 5.000000e-01 : f32
    %68 = vector.broadcast %cst_19 : f32 to vector<4x1xf32>
    %69 = arith.mulf %68, %33 : vector<4x1xf32>
    %70 = arith.subf %31, %69 : vector<4x1xf32>
    %cst_20 = arith.constant 5.000000e-01 : f32
    %71 = vector.broadcast %cst_20 : f32 to vector<4x1xf32>
    %72 = arith.mulf %71, %32 : vector<4x1xf32>
    %73 = arith.addf %30, %72 : vector<4x1xf32>
    %cst_21 = arith.constant 5.000000e-01 : f32
    %74 = vector.broadcast %cst_21 : f32 to vector<4x1xf32>
    %75 = arith.mulf %74, %33 : vector<4x1xf32>
    %76 = arith.addf %31, %75 : vector<4x1xf32>
    %77 = arith.subf %61, %55 : vector<1x128xf32>
    %78 = arith.subf %64, %58 : vector<1x128xf32>
    %79 = arith.mulf %77, %78 : vector<1x128xf32>
    %80 = arith.subf %73, %67 : vector<4x1xf32>
    %81 = arith.subf %76, %70 : vector<4x1xf32>
    %82 = arith.mulf %80, %81 : vector<4x1xf32>
    %83 = vector.broadcast %61 : vector<1x128xf32> to vector<4x128xf32>
    %84 = vector.broadcast %73 : vector<4x1xf32> to vector<4x128xf32>
    %85 = arith.minimumf %83, %84 : vector<4x128xf32>
    %86 = vector.broadcast %55 : vector<1x128xf32> to vector<4x128xf32>
    %87 = vector.broadcast %67 : vector<4x1xf32> to vector<4x128xf32>
    %88 = arith.maximumf %86, %87 : vector<4x128xf32>
    %89 = arith.subf %85, %88 : vector<4x128xf32>
    %cst_22 = arith.constant 0.000000e+00 : f32
    %90 = vector.broadcast %cst_22 : f32 to vector<4x128xf32>
    %91 = arith.maximumf %89, %90 : vector<4x128xf32>
    %92 = vector.broadcast %64 : vector<1x128xf32> to vector<4x128xf32>
    %93 = vector.broadcast %76 : vector<4x1xf32> to vector<4x128xf32>
    %94 = arith.minimumf %92, %93 : vector<4x128xf32>
    %95 = vector.broadcast %58 : vector<1x128xf32> to vector<4x128xf32>
    %96 = vector.broadcast %70 : vector<4x1xf32> to vector<4x128xf32>
    %97 = arith.maximumf %95, %96 : vector<4x128xf32>
    %98 = arith.subf %94, %97 : vector<4x128xf32>
    %cst_23 = arith.constant 0.000000e+00 : f32
    %99 = vector.broadcast %cst_23 : f32 to vector<4x128xf32>
    %100 = arith.maximumf %98, %99 : vector<4x128xf32>
    %101 = arith.mulf %91, %100 : vector<4x128xf32>
    %102 = vector.broadcast %79 : vector<1x128xf32> to vector<4x128xf32>
    %103 = vector.broadcast %82 : vector<4x1xf32> to vector<4x128xf32>
    %104 = arith.addf %102, %103 : vector<4x128xf32>
    %105 = arith.subf %104, %101 : vector<4x128xf32>
    %106 = tpu.reciprocal %105 {approx = true} : vector<4x128xf32> -> vector<4x128xf32>
    %107 = arith.mulf %101, %106 : vector<4x128xf32>
    %108 = vector.broadcast %61 : vector<1x128xf32> to vector<4x128xf32>
    %109 = vector.broadcast %73 : vector<4x1xf32> to vector<4x128xf32>
    %110 = arith.maximumf %108, %109 : vector<4x128xf32>
    %111 = vector.broadcast %55 : vector<1x128xf32> to vector<4x128xf32>
    %112 = vector.broadcast %67 : vector<4x1xf32> to vector<4x128xf32>
    %113 = arith.minimumf %111, %112 : vector<4x128xf32>
    %114 = arith.subf %110, %113 : vector<4x128xf32>
    %115 = vector.broadcast %64 : vector<1x128xf32> to vector<4x128xf32>
    %116 = vector.broadcast %76 : vector<4x1xf32> to vector<4x128xf32>
    %117 = arith.maximumf %115, %116 : vector<4x128xf32>
    %118 = vector.broadcast %58 : vector<1x128xf32> to vector<4x128xf32>
    %119 = vector.broadcast %70 : vector<4x1xf32> to vector<4x128xf32>
    %120 = arith.minimumf %118, %119 : vector<4x128xf32>
    %121 = arith.subf %117, %120 : vector<4x128xf32>
    %122 = arith.mulf %114, %121 : vector<4x128xf32>
    %123 = arith.subf %122, %105 : vector<4x128xf32>
    %124 = tpu.reciprocal %122 {approx = true} : vector<4x128xf32> -> vector<4x128xf32>
    %125 = arith.mulf %123, %124 : vector<4x128xf32>
    %126 = arith.subf %107, %125 : vector<4x128xf32>
    %cst_24 = arith.constant 5.000000e+00 : f32
    %127 = vector.broadcast %cst_24 : f32 to vector<4x128xf32>
    %128 = arith.mulf %127, %52 : vector<4x128xf32>
    %cst_25 = arith.constant 1.000000e+00 : f32
    %129 = vector.broadcast %cst_25 : f32 to vector<4x128xf32>
    %130 = arith.mulf %129, %21 : vector<4x128xf32>
    %131 = arith.addf %128, %130 : vector<4x128xf32>
    %cst_26 = arith.constant 0.000000e+00 : f32
    %132 = vector.broadcast %cst_26 : f32 to vector<4x128xf32>
    %133 = arith.subf %132, %126 : vector<4x128xf32>
    %cst_27 = arith.constant 2.000000e+00 : f32
    %134 = vector.broadcast %cst_27 : f32 to vector<4x128xf32>
    %135 = arith.mulf %134, %133 : vector<4x128xf32>
    %136 = arith.addf %131, %135 : vector<4x128xf32>
    %c0_28 = arith.constant 0 : index
    %c0_29 = arith.constant 0 : index
    %c0_30 = arith.constant 0 : index
    %137 = vector.load %arg4[%c0_28, %c0_29, %c0_30] : memref<2x4x128xf32, #tpu.memory_space<vmem>>, vector<1x4x128xf32>
    %138 = vector.shape_cast %137 : vector<1x4x128xf32> to vector<4x128xf32>
    %139 = vector.shape_cast %136 : vector<4x128xf32> to vector<1x4x128xf32>
    tpu.vector_store %arg4[%c0_28, %c0_29, %c0_30], %139 {strides = array<i32>} : memref<2x4x128xf32, #tpu.memory_space<vmem>>, vector<1x4x128xf32>,
    %c1 = arith.constant 1 : index
    %c0_31 = arith.constant 0 : index
    %c0_32 = arith.constant 0 : index
    %140 = vector.load %arg0[%c1, %c0_31, %c0_32] : memref<2x5x128xf32, #tpu.memory_space<vmem>>, vector<1x5x128xf32>
    %141 = vector.shape_cast %140 : vector<1x5x128xf32> to vector<5x128xf32>
    %cst_33 = arith.constant dense<0xFF800000> : vector<128xf32>
    %142 = vector.multi_reduction <maximumf>, %141, %cst_33 [0] : vector<5x128xf32> to vector<128xf32>
    %143 = vector.shape_cast %142 : vector<128xf32> to vector<1x128xf32>
    %144 = vector.broadcast %143 : vector<1x128xf32> to vector<5x128xf32>
    %145 = arith.subf %141, %144 : vector<5x128xf32>
    %146 = math.exp %145 : vector<5x128xf32>
    %cst_34 = arith.constant dense<0.000000e+00> : vector<128xf32>
    %147 = vector.multi_reduction <add>, %146, %cst_34 [0] : vector<5x128xf32> to vector<128xf32>
    %148 = vector.shape_cast %147 : vector<128xf32> to vector<1x128xf32>
    %149 = tpu.reciprocal %148 {approx = true} : vector<1x128xf32> -> vector<1x128xf32>
    %150 = vector.broadcast %149 : vector<1x128xf32> to vector<5x128xf32>
    %151 = arith.mulf %146, %150 : vector<5x128xf32>
    %c1_35 = arith.constant 1 : index
    %c0_36 = arith.constant 0 : index
    %c0_37 = arith.constant 0 : index
    %152 = vector.load %arg2[%c1_35, %c0_36, %c0_37] : memref<2x4x1xi32, #tpu.memory_space<vmem>>, vector<1x4x1xi32>
    %153 = vector.shape_cast %152 : vector<1x4x1xi32> to vector<4x1xi32>
    %154 = tpu.iota {dimensions = array<i32: 1>} : vector<4x5xi32>
    %155 = vector.broadcast %153 : vector<4x1xi32> to vector<4x5xi32>
    %156 = arith.cmpi eq, %154, %155 : vector<4x5xi32>
    %157 = arith.extui %156 : vector<4x5xi1> to vector<4x5xi32>
    %158 = arith.sitofp %157 : vector<4x5xi32> to vector<4x5xf32>
    %cst_38 = arith.constant dense<0.000000e+00> : vector<4x128xf32>
    %159 = tpu.matmul %158, %151, %cst_38 {dimension_numbers = #tpu.dot_dimension_numbers<[1], [0], [0], [1], [0, 0, 1, 1], [], []>} : vector<4x5xf32>, vector<5x128xf32>, vector<4x128xf32> -> vector<4x128xf32>
    %cst_39 = arith.constant 0.000000e+00 : f32
    %160 = vector.broadcast %cst_39 : f32 to vector<4x128xf32>
    %161 = arith.subf %160, %159 : vector<4x128xf32>
    %c1_40 = arith.constant 1 : index
    %c0_41 = arith.constant 0 : index
    %c0_42 = arith.constant 0 : index
    %162 = vector.load %arg1[%c1_40, %c0_41, %c0_42] : memref<2x4x128xf32, #tpu.memory_space<vmem>>, vector<1x4x128xf32>
    %163 = vector.shape_cast %162 : vector<1x4x128xf32> to vector<4x128xf32>
    %164 = vector.extract_strided_slice %163 {offsets = [0, 0], sizes = [1, 128], strides = [1, 1]} : vector<4x128xf32> to vector<1x128xf32>
    %165 = vector.extract_strided_slice %163 {offsets = [1, 0], sizes = [1, 128], strides = [1, 1]} : vector<4x128xf32> to vector<1x128xf32>
    %166 = vector.extract_strided_slice %163 {offsets = [2, 0], sizes = [1, 128], strides = [1, 1]} : vector<4x128xf32> to vector<1x128xf32>
    %167 = vector.extract_strided_slice %163 {offsets = [3, 0], sizes = [1, 128], strides = [1, 1]} : vector<4x128xf32> to vector<1x128xf32>
    %c1_43 = arith.constant 1 : index
    %c0_44 = arith.constant 0 : index
    %c0_45 = arith.constant 0 : index
    %168 = vector.load %arg3[%c1_43, %c0_44, %c0_45] : memref<2x4x4xf32, #tpu.memory_space<vmem>>, vector<1x4x4xf32>
    %169 = vector.shape_cast %168 : vector<1x4x4xf32> to vector<4x4xf32>
    %170 = vector.extract_strided_slice %169 {offsets = [0, 0], sizes = [4, 1], strides = [1, 1]} : vector<4x4xf32> to vector<4x1xf32>
    %171 = vector.extract_strided_slice %169 {offsets = [0, 1], sizes = [4, 1], strides = [1, 1]} : vector<4x4xf32> to vector<4x1xf32>
    %172 = vector.extract_strided_slice %169 {offsets = [0, 2], sizes = [4, 1], strides = [1, 1]} : vector<4x4xf32> to vector<4x1xf32>
    %173 = vector.extract_strided_slice %169 {offsets = [0, 3], sizes = [4, 1], strides = [1, 1]} : vector<4x4xf32> to vector<4x1xf32>
    %174 = vector.broadcast %170 : vector<4x1xf32> to vector<4x128xf32>
    %175 = vector.broadcast %164 : vector<1x128xf32> to vector<4x128xf32>
    %176 = arith.subf %174, %175 : vector<4x128xf32>
    %177 = math.absf %176 : vector<4x128xf32>
    %178 = vector.broadcast %171 : vector<4x1xf32> to vector<4x128xf32>
    %179 = vector.broadcast %165 : vector<1x128xf32> to vector<4x128xf32>
    %180 = arith.subf %178, %179 : vector<4x128xf32>
    %181 = math.absf %180 : vector<4x128xf32>
    %182 = arith.addf %177, %181 : vector<4x128xf32>
    %183 = vector.broadcast %172 : vector<4x1xf32> to vector<4x128xf32>
    %184 = vector.broadcast %166 : vector<1x128xf32> to vector<4x128xf32>
    %185 = arith.subf %183, %184 : vector<4x128xf32>
    %186 = math.absf %185 : vector<4x128xf32>
    %187 = arith.addf %182, %186 : vector<4x128xf32>
    %188 = vector.broadcast %173 : vector<4x1xf32> to vector<4x128xf32>
    %189 = vector.broadcast %167 : vector<1x128xf32> to vector<4x128xf32>
    %190 = arith.subf %188, %189 : vector<4x128xf32>
    %191 = math.absf %190 : vector<4x128xf32>
    %192 = arith.addf %187, %191 : vector<4x128xf32>
    %cst_46 = arith.constant 5.000000e-01 : f32
    %193 = vector.broadcast %cst_46 : f32 to vector<1x128xf32>
    %194 = arith.mulf %193, %166 : vector<1x128xf32>
    %195 = arith.subf %164, %194 : vector<1x128xf32>
    %cst_47 = arith.constant 5.000000e-01 : f32
    %196 = vector.broadcast %cst_47 : f32 to vector<1x128xf32>
    %197 = arith.mulf %196, %167 : vector<1x128xf32>
    %198 = arith.subf %165, %197 : vector<1x128xf32>
    %cst_48 = arith.constant 5.000000e-01 : f32
    %199 = vector.broadcast %cst_48 : f32 to vector<1x128xf32>
    %200 = arith.mulf %199, %166 : vector<1x128xf32>
    %201 = arith.addf %164, %200 : vector<1x128xf32>
    %cst_49 = arith.constant 5.000000e-01 : f32
    %202 = vector.broadcast %cst_49 : f32 to vector<1x128xf32>
    %203 = arith.mulf %202, %167 : vector<1x128xf32>
    %204 = arith.addf %165, %203 : vector<1x128xf32>
    %cst_50 = arith.constant 5.000000e-01 : f32
    %205 = vector.broadcast %cst_50 : f32 to vector<4x1xf32>
    %206 = arith.mulf %205, %172 : vector<4x1xf32>
    %207 = arith.subf %170, %206 : vector<4x1xf32>
    %cst_51 = arith.constant 5.000000e-01 : f32
    %208 = vector.broadcast %cst_51 : f32 to vector<4x1xf32>
    %209 = arith.mulf %208, %173 : vector<4x1xf32>
    %210 = arith.subf %171, %209 : vector<4x1xf32>
    %cst_52 = arith.constant 5.000000e-01 : f32
    %211 = vector.broadcast %cst_52 : f32 to vector<4x1xf32>
    %212 = arith.mulf %211, %172 : vector<4x1xf32>
    %213 = arith.addf %170, %212 : vector<4x1xf32>
    %cst_53 = arith.constant 5.000000e-01 : f32
    %214 = vector.broadcast %cst_53 : f32 to vector<4x1xf32>
    %215 = arith.mulf %214, %173 : vector<4x1xf32>
    %216 = arith.addf %171, %215 : vector<4x1xf32>
    %217 = arith.subf %201, %195 : vector<1x128xf32>
    %218 = arith.subf %204, %198 : vector<1x128xf32>
    %219 = arith.mulf %217, %218 : vector<1x128xf32>
    %220 = arith.subf %213, %207 : vector<4x1xf32>
    %221 = arith.subf %216, %210 : vector<4x1xf32>
    %222 = arith.mulf %220, %221 : vector<4x1xf32>
    %223 = vector.broadcast %201 : vector<1x128xf32> to vector<4x128xf32>
    %224 = vector.broadcast %213 : vector<4x1xf32> to vector<4x128xf32>
    %225 = arith.minimumf %223, %224 : vector<4x128xf32>
    %226 = vector.broadcast %195 : vector<1x128xf32> to vector<4x128xf32>
    %227 = vector.broadcast %207 : vector<4x1xf32> to vector<4x128xf32>
    %228 = arith.maximumf %226, %227 : vector<4x128xf32>
    %229 = arith.subf %225, %228 : vector<4x128xf32>
    %cst_54 = arith.constant 0.000000e+00 : f32
    %230 = vector.broadcast %cst_54 : f32 to vector<4x128xf32>
    %231 = arith.maximumf %229, %230 : vector<4x128xf32>
    %232 = vector.broadcast %204 : vector<1x128xf32> to vector<4x128xf32>
    %233 = vector.broadcast %216 : vector<4x1xf32> to vector<4x128xf32>
    %234 = arith.minimumf %232, %233 : vector<4x128xf32>
    %235 = vector.broadcast %198 : vector<1x128xf32> to vector<4x128xf32>
    %236 = vector.broadcast %210 : vector<4x1xf32> to vector<4x128xf32>
    %237 = arith.maximumf %235, %236 : vector<4x128xf32>
    %238 = arith.subf %234, %237 : vector<4x128xf32>
    %cst_55 = arith.constant 0.000000e+00 : f32
    %239 = vector.broadcast %cst_55 : f32 to vector<4x128xf32>
    %240 = arith.maximumf %238, %239 : vector<4x128xf32>
    %241 = arith.mulf %231, %240 : vector<4x128xf32>
    %242 = vector.broadcast %219 : vector<1x128xf32> to vector<4x128xf32>
    %243 = vector.broadcast %222 : vector<4x1xf32> to vector<4x128xf32>
    %244 = arith.addf %242, %243 : vector<4x128xf32>
    %245 = arith.subf %244, %241 : vector<4x128xf32>
    %246 = tpu.reciprocal %245 {approx = true} : vector<4x128xf32> -> vector<4x128xf32>
    %247 = arith.mulf %241, %246 : vector<4x128xf32>
    %248 = vector.broadcast %201 : vector<1x128xf32> to vector<4x128xf32>
    %249 = vector.broadcast %213 : vector<4x1xf32> to vector<4x128xf32>
    %250 = arith.maximumf %248, %249 : vector<4x128xf32>
    %251 = vector.broadcast %195 : vector<1x128xf32> to vector<4x128xf32>
    %252 = vector.broadcast %207 : vector<4x1xf32> to vector<4x128xf32>
    %253 = arith.minimumf %251, %252 : vector<4x128xf32>
    %254 = arith.subf %250, %253 : vector<4x128xf32>
    %255 = vector.broadcast %204 : vector<1x128xf32> to vector<4x128xf32>
    %256 = vector.broadcast %216 : vector<4x1xf32> to vector<4x128xf32>
    %257 = arith.maximumf %255, %256 : vector<4x128xf32>
    %258 = vector.broadcast %198 : vector<1x128xf32> to vector<4x128xf32>
    %259 = vector.broadcast %210 : vector<4x1xf32> to vector<4x128xf32>
    %260 = arith.minimumf %258, %259 : vector<4x128xf32>
    %261 = arith.subf %257, %260 : vector<4x128xf32>
    %262 = arith.mulf %254, %261 : vector<4x128xf32>
    %263 = arith.subf %262, %245 : vector<4x128xf32>
    %264 = tpu.reciprocal %262 {approx = true} : vector<4x128xf32> -> vector<4x128xf32>
    %265 = arith.mulf %263, %264 : vector<4x128xf32>
    %266 = arith.subf %247, %265 : vector<4x128xf32>
    %cst_56 = arith.constant 5.000000e+00 : f32
    %267 = vector.broadcast %cst_56 : f32 to vector<4x128xf32>
    %268 = arith.mulf %267, %192 : vector<4x128xf32>
    %cst_57 = arith.constant 1.000000e+00 : f32
    %269 = vector.broadcast %cst_57 : f32 to vector<4x128xf32>
    %270 = arith.mulf %269, %161 : vector<4x128xf32>
    %271 = arith.addf %268, %270 : vector<4x128xf32>
    %cst_58 = arith.constant 0.000000e+00 : f32
    %272 = vector.broadcast %cst_58 : f32 to vector<4x128xf32>
    %273 = arith.subf %272, %266 : vector<4x128xf32>
    %cst_59 = arith.constant 2.000000e+00 : f32
    %274 = vector.broadcast %cst_59 : f32 to vector<4x128xf32>
    %275 = arith.mulf %274, %273 : vector<4x128xf32>
    %276 = arith.addf %271, %275 : vector<4x128xf32>
    %c1_60 = arith.constant 1 : index
    %c0_61 = arith.constant 0 : index
    %c0_62 = arith.constant 0 : index
    %277 = vector.load %arg4[%c1_60, %c0_61, %c0_62] : memref<2x4x128xf32, #tpu.memory_space<vmem>>, vector<1x4x128xf32>
    %278 = vector.shape_cast %277 : vector<1x4x128xf32> to vector<4x128xf32>
    %279 = vector.shape_cast %276 : vector<4x128xf32> to vector<1x4x128xf32>
    tpu.vector_store %arg4[%c1_60, %c0_61, %c0_62], %279 {strides = array<i32>} : memref<2x4x128xf32, #tpu.memory_space<vmem>>, vector<1x4x128xf32>,
    return
  }
}

module attributes {stable_mosaic.version = 11 : i64} {
  func.func @losses_kernel(%arg0: memref<2x5x16xf32, #tpu.memory_space<vmem>>, %arg1: memref<2x1x16xi32, #tpu.memory_space<vmem>>, %arg2: memref<2x1x1xf32, #tpu.memory_space<vmem>>, %arg3: memref<4x8xf32, #tpu.memory_space<vmem>>, %arg4: memref<4x8xf32, #tpu.memory_space<vmem>>, %arg5: memref<5x8xf32, #tpu.memory_space<vmem>>, %arg6: memref<1x8xi32, #tpu.memory_space<vmem>>, %arg7: memref<1x1xf32, #tpu.memory_space<vmem>>, %arg8: memref<1x8xf32, #tpu.memory_space<vmem>>) attributes {dimension_semantics = [], scalar_prefetch = 0 : i64, scratch_operands = 0 : i64, tpu.core_type = #tpu.core_type<tc>} {
    %cst = arith.constant 0.000000e+00 : f32
    %0 = vector.broadcast %cst : f32 to vector<1x1xf32>
    %cst_0 = arith.constant 0.000000e+00 : f32
    %1 = vector.broadcast %cst_0 : f32 to vector<1x1xf32>
    %cst_1 = arith.constant 0.000000e+00 : f32
    %2 = vector.broadcast %cst_1 : f32 to vector<1x1xf32>
    %c0 = arith.constant 0 : index
    %c0_2 = arith.constant 0 : index
    %c0_3 = arith.constant 0 : index
    %3 = vector.load %arg0[%c0, %c0_2, %c0_3] : memref<2x5x16xf32, #tpu.memory_space<vmem>>, vector<1x5x16xf32>
    %4 = vector.shape_cast %3 : vector<1x5x16xf32> to vector<5x16xf32>
    %c0_4 = arith.constant 0 : index
    %c0_5 = arith.constant 0 : index
    %c0_6 = arith.constant 0 : index
    %5 = vector.load %arg1[%c0_4, %c0_5, %c0_6] : memref<2x1x16xi32, #tpu.memory_space<vmem>>, vector<1x1x16xi32>
    %6 = vector.shape_cast %5 : vector<1x1x16xi32> to vector<1x16xi32>
    %cst_7 = arith.constant dense<0xFF800000> : vector<16xf32>
    %7 = vector.multi_reduction <maximumf>, %4, %cst_7 [0] : vector<5x16xf32> to vector<16xf32>
    %8 = vector.shape_cast %7 : vector<16xf32> to vector<1x16xf32>
    %9 = vector.broadcast %8 : vector<1x16xf32> to vector<5x16xf32>
    %10 = arith.subf %4, %9 : vector<5x16xf32>
    %11 = math.exp %10 : vector<5x16xf32>
    %cst_8 = arith.constant dense<0.000000e+00> : vector<16xf32>
    %12 = vector.multi_reduction <add>, %11, %cst_8 [0] : vector<5x16xf32> to vector<16xf32>
    %13 = vector.shape_cast %12 : vector<16xf32> to vector<1x16xf32>
    %14 = math.log %13 : vector<1x16xf32>
    %15 = arith.addf %8, %14 : vector<1x16xf32>
    %16 = tpu.iota {dimensions = array<i32: 0>} : vector<5x16xi32>
    %17 = vector.broadcast %6 : vector<1x16xi32> to vector<5x16xi32>
    %18 = arith.cmpi eq, %16, %17 : vector<5x16xi32>
    %19 = arith.extui %18 : vector<5x16xi1> to vector<5x16xi32>
    %20 = arith.sitofp %19 : vector<5x16xi32> to vector<5x16xf32>
    %21 = vector.broadcast %15 : vector<1x16xf32> to vector<5x16xf32>
    %22 = arith.subf %4, %21 : vector<5x16xf32>
    %23 = arith.mulf %20, %22 : vector<5x16xf32>
    %cst_9 = arith.constant dense<0.000000e+00> : vector<16xf32>
    %24 = vector.multi_reduction <add>, %23, %cst_9 [0] : vector<5x16xf32> to vector<16xf32>
    %25 = vector.shape_cast %24 : vector<16xf32> to vector<1x16xf32>
    %c4_i32 = arith.constant 4 : i32
    %26 = vector.broadcast %c4_i32 : i32 to vector<1x16xi32>
    %27 = arith.cmpi eq, %6, %26 : vector<1x16xi32>
    %cst_10 = arith.constant 1.000000e-01 : f32
    %cst_11 = arith.constant 1.000000e+00 : f32
    %28 = vector.broadcast %cst_10 : f32 to vector<1x16xf32>
    %29 = vector.broadcast %cst_11 : f32 to vector<1x16xf32>
    %30 = arith.select %27, %28, %29 : vector<1x16xi1>, vector<1x16xf32>
    %cst_12 = arith.constant 0.000000e+00 : f32
    %31 = vector.broadcast %cst_12 : f32 to vector<1x16xf32>
    %32 = arith.subf %31, %25 : vector<1x16xf32>
    %33 = arith.mulf %30, %32 : vector<1x16xf32>
    %cst_13 = arith.constant dense<0.000000e+00> : vector<1xf32>
    %34 = vector.multi_reduction <add>, %33, %cst_13 [1] : vector<1x16xf32> to vector<1xf32>
    %35 = vector.shape_cast %34 : vector<1xf32> to vector<1x1xf32>
    %36 = arith.addf %0, %35 : vector<1x1xf32>
    %cst_14 = arith.constant dense<0.000000e+00> : vector<1xf32>
    %37 = vector.multi_reduction <add>, %30, %cst_14 [1] : vector<1x16xf32> to vector<1xf32>
    %38 = vector.shape_cast %37 : vector<1xf32> to vector<1x1xf32>
    %39 = arith.addf %1, %38 : vector<1x1xf32>
    %40 = vector.extract_strided_slice %4 {offsets = [0, 0], sizes = [4, 16], strides = [1, 1]} : vector<5x16xf32> to vector<4x16xf32>
    %cst_15 = arith.constant dense<0xFF800000> : vector<16xf32>
    %41 = vector.multi_reduction <maximumf>, %40, %cst_15 [0] : vector<4x16xf32> to vector<16xf32>
    %42 = vector.shape_cast %41 : vector<16xf32> to vector<1x16xf32>
    %43 = vector.extract_strided_slice %4 {offsets = [4, 0], sizes = [1, 16], strides = [1, 1]} : vector<5x16xf32> to vector<1x16xf32>
    %44 = arith.cmpf oge, %42, %43 : vector<1x16xf32>
    %45 = arith.extui %44 : vector<1x16xi1> to vector<1x16xi32>
    %46 = arith.sitofp %45 : vector<1x16xi32> to vector<1x16xf32>
    %cst_16 = arith.constant dense<0.000000e+00> : vector<1xf32>
    %47 = vector.multi_reduction <add>, %46, %cst_16 [1] : vector<1x16xf32> to vector<1xf32>
    %48 = vector.shape_cast %47 : vector<1xf32> to vector<1x1xf32>
    %c0_17 = arith.constant 0 : index
    %c0_18 = arith.constant 0 : index
    %c0_19 = arith.constant 0 : index
    %49 = vector.load %arg2[%c0_17, %c0_18, %c0_19] : memref<2x1x1xf32, #tpu.memory_space<vmem>>, vector<1x1x1xf32>
    %50 = vector.shape_cast %49 : vector<1x1x1xf32> to vector<1x1xf32>
    %51 = arith.subf %48, %50 : vector<1x1xf32>
    %52 = math.absf %51 : vector<1x1xf32>
    %53 = arith.addf %2, %52 : vector<1x1xf32>
    %c1 = arith.constant 1 : index
    %c0_20 = arith.constant 0 : index
    %c0_21 = arith.constant 0 : index
    %54 = vector.load %arg0[%c1, %c0_20, %c0_21] : memref<2x5x16xf32, #tpu.memory_space<vmem>>, vector<1x5x16xf32>
    %55 = vector.shape_cast %54 : vector<1x5x16xf32> to vector<5x16xf32>
    %c1_22 = arith.constant 1 : index
    %c0_23 = arith.constant 0 : index
    %c0_24 = arith.constant 0 : index
    %56 = vector.load %arg1[%c1_22, %c0_23, %c0_24] : memref<2x1x16xi32, #tpu.memory_space<vmem>>, vector<1x1x16xi32>
    %57 = vector.shape_cast %56 : vector<1x1x16xi32> to vector<1x16xi32>
    %cst_25 = arith.constant dense<0xFF800000> : vector<16xf32>
    %58 = vector.multi_reduction <maximumf>, %55, %cst_25 [0] : vector<5x16xf32> to vector<16xf32>
    %59 = vector.shape_cast %58 : vector<16xf32> to vector<1x16xf32>
    %60 = vector.broadcast %59 : vector<1x16xf32> to vector<5x16xf32>
    %61 = arith.subf %55, %60 : vector<5x16xf32>
    %62 = math.exp %61 : vector<5x16xf32>
    %cst_26 = arith.constant dense<0.000000e+00> : vector<16xf32>
    %63 = vector.multi_reduction <add>, %62, %cst_26 [0] : vector<5x16xf32> to vector<16xf32>
    %64 = vector.shape_cast %63 : vector<16xf32> to vector<1x16xf32>
    %65 = math.log %64 : vector<1x16xf32>
    %66 = arith.addf %59, %65 : vector<1x16xf32>
    %67 = tpu.iota {dimensions = array<i32: 0>} : vector<5x16xi32>
    %68 = vector.broadcast %57 : vector<1x16xi32> to vector<5x16xi32>
    %69 = arith.cmpi eq, %67, %68 : vector<5x16xi32>
    %70 = arith.extui %69 : vector<5x16xi1> to vector<5x16xi32>
    %71 = arith.sitofp %70 : vector<5x16xi32> to vector<5x16xf32>
    %72 = vector.broadcast %66 : vector<1x16xf32> to vector<5x16xf32>
    %73 = arith.subf %55, %72 : vector<5x16xf32>
    %74 = arith.mulf %71, %73 : vector<5x16xf32>
    %cst_27 = arith.constant dense<0.000000e+00> : vector<16xf32>
    %75 = vector.multi_reduction <add>, %74, %cst_27 [0] : vector<5x16xf32> to vector<16xf32>
    %76 = vector.shape_cast %75 : vector<16xf32> to vector<1x16xf32>
    %c4_i32_28 = arith.constant 4 : i32
    %77 = vector.broadcast %c4_i32_28 : i32 to vector<1x16xi32>
    %78 = arith.cmpi eq, %57, %77 : vector<1x16xi32>
    %cst_29 = arith.constant 1.000000e-01 : f32
    %cst_30 = arith.constant 1.000000e+00 : f32
    %79 = vector.broadcast %cst_29 : f32 to vector<1x16xf32>
    %80 = vector.broadcast %cst_30 : f32 to vector<1x16xf32>
    %81 = arith.select %78, %79, %80 : vector<1x16xi1>, vector<1x16xf32>
    %cst_31 = arith.constant 0.000000e+00 : f32
    %82 = vector.broadcast %cst_31 : f32 to vector<1x16xf32>
    %83 = arith.subf %82, %76 : vector<1x16xf32>
    %84 = arith.mulf %81, %83 : vector<1x16xf32>
    %cst_32 = arith.constant dense<0.000000e+00> : vector<1xf32>
    %85 = vector.multi_reduction <add>, %84, %cst_32 [1] : vector<1x16xf32> to vector<1xf32>
    %86 = vector.shape_cast %85 : vector<1xf32> to vector<1x1xf32>
    %87 = arith.addf %36, %86 : vector<1x1xf32>
    %cst_33 = arith.constant dense<0.000000e+00> : vector<1xf32>
    %88 = vector.multi_reduction <add>, %81, %cst_33 [1] : vector<1x16xf32> to vector<1xf32>
    %89 = vector.shape_cast %88 : vector<1xf32> to vector<1x1xf32>
    %90 = arith.addf %39, %89 : vector<1x1xf32>
    %91 = vector.extract_strided_slice %55 {offsets = [0, 0], sizes = [4, 16], strides = [1, 1]} : vector<5x16xf32> to vector<4x16xf32>
    %cst_34 = arith.constant dense<0xFF800000> : vector<16xf32>
    %92 = vector.multi_reduction <maximumf>, %91, %cst_34 [0] : vector<4x16xf32> to vector<16xf32>
    %93 = vector.shape_cast %92 : vector<16xf32> to vector<1x16xf32>
    %94 = vector.extract_strided_slice %55 {offsets = [4, 0], sizes = [1, 16], strides = [1, 1]} : vector<5x16xf32> to vector<1x16xf32>
    %95 = arith.cmpf oge, %93, %94 : vector<1x16xf32>
    %96 = arith.extui %95 : vector<1x16xi1> to vector<1x16xi32>
    %97 = arith.sitofp %96 : vector<1x16xi32> to vector<1x16xf32>
    %cst_35 = arith.constant dense<0.000000e+00> : vector<1xf32>
    %98 = vector.multi_reduction <add>, %97, %cst_35 [1] : vector<1x16xf32> to vector<1xf32>
    %99 = vector.shape_cast %98 : vector<1xf32> to vector<1x1xf32>
    %c1_36 = arith.constant 1 : index
    %c0_37 = arith.constant 0 : index
    %c0_38 = arith.constant 0 : index
    %100 = vector.load %arg2[%c1_36, %c0_37, %c0_38] : memref<2x1x1xf32, #tpu.memory_space<vmem>>, vector<1x1x1xf32>
    %101 = vector.shape_cast %100 : vector<1x1x1xf32> to vector<1x1xf32>
    %102 = arith.subf %99, %101 : vector<1x1xf32>
    %103 = math.absf %102 : vector<1x1xf32>
    %104 = arith.addf %53, %103 : vector<1x1xf32>
    %105 = tpu.reciprocal %90 {approx = true} : vector<1x1xf32> -> vector<1x1xf32>
    %106 = arith.mulf %87, %105 : vector<1x1xf32>
    %cst_39 = arith.constant 5.000000e-01 : f32
    %107 = vector.broadcast %cst_39 : f32 to vector<1x1xf32>
    %108 = arith.mulf %104, %107 : vector<1x1xf32>
    %c0_40 = arith.constant 0 : index
    %c0_41 = arith.constant 0 : index
    %109 = vector.load %arg5[%c0_40, %c0_41] : memref<5x8xf32, #tpu.memory_space<vmem>>, vector<5x8xf32>
    %c0_42 = arith.constant 0 : index
    %c0_43 = arith.constant 0 : index
    %110 = vector.load %arg6[%c0_42, %c0_43] : memref<1x8xi32, #tpu.memory_space<vmem>>, vector<1x8xi32>
    %111 = tpu.iota {dimensions = array<i32: 0>} : vector<5x8xi32>
    %112 = vector.broadcast %110 : vector<1x8xi32> to vector<5x8xi32>
    %113 = arith.cmpi eq, %111, %112 : vector<5x8xi32>
    %114 = arith.extui %113 : vector<5x8xi1> to vector<5x8xi32>
    %115 = arith.sitofp %114 : vector<5x8xi32> to vector<5x8xf32>
    %116 = arith.mulf %115, %109 : vector<5x8xf32>
    %cst_44 = arith.constant dense<0.000000e+00> : vector<8xf32>
    %117 = vector.multi_reduction <add>, %116, %cst_44 [0] : vector<5x8xf32> to vector<8xf32>
    %118 = vector.shape_cast %117 : vector<8xf32> to vector<1x8xf32>
    %cst_45 = arith.constant dense<0xFF800000> : vector<8xf32>
    %119 = vector.multi_reduction <maximumf>, %109, %cst_45 [0] : vector<5x8xf32> to vector<8xf32>
    %120 = vector.shape_cast %119 : vector<8xf32> to vector<1x8xf32>
    %121 = arith.cmpf oge, %118, %120 : vector<1x8xf32>
    %122 = arith.extui %121 : vector<1x8xi1> to vector<1x8xi32>
    %123 = arith.sitofp %122 : vector<1x8xi32> to vector<1x8xf32>
    %cst_46 = arith.constant dense<0.000000e+00> : vector<1xf32>
    %124 = vector.multi_reduction <add>, %123, %cst_46 [1] : vector<1x8xf32> to vector<1xf32>
    %125 = vector.shape_cast %124 : vector<1xf32> to vector<1x1xf32>
    %cst_47 = arith.constant 1.250000e+01 : f32
    %126 = vector.broadcast %cst_47 : f32 to vector<1x1xf32>
    %127 = arith.mulf %126, %125 : vector<1x1xf32>
    %cst_48 = arith.constant 1.000000e+02 : f32
    %128 = vector.broadcast %cst_48 : f32 to vector<1x1xf32>
    %129 = arith.subf %128, %127 : vector<1x1xf32>
    %c0_49 = arith.constant 0 : index
    %c0_50 = arith.constant 0 : index
    %130 = vector.load %arg7[%c0_49, %c0_50] : memref<1x1xf32, #tpu.memory_space<vmem>>, vector<1x1xf32>
    %131 = tpu.reciprocal %130 {approx = true} : vector<1x1xf32> -> vector<1x1xf32>
    %c0_51 = arith.constant 0 : index
    %c0_52 = arith.constant 0 : index
    %132 = vector.load %arg3[%c0_51, %c0_52] : memref<4x8xf32, #tpu.memory_space<vmem>>, vector<4x8xf32>
    %c0_53 = arith.constant 0 : index
    %c0_54 = arith.constant 0 : index
    %133 = vector.load %arg4[%c0_53, %c0_54] : memref<4x8xf32, #tpu.memory_space<vmem>>, vector<4x8xf32>
    %134 = arith.subf %132, %133 : vector<4x8xf32>
    %135 = math.absf %134 : vector<4x8xf32>
    %cst_55 = arith.constant dense<0.000000e+00> : vector<8xf32>
    %136 = vector.multi_reduction <add>, %135, %cst_55 [0] : vector<4x8xf32> to vector<8xf32>
    %137 = vector.shape_cast %136 : vector<8xf32> to vector<1x8xf32>
    %cst_56 = arith.constant dense<0.000000e+00> : vector<1xf32>
    %138 = vector.multi_reduction <add>, %137, %cst_56 [1] : vector<1x8xf32> to vector<1xf32>
    %139 = vector.shape_cast %138 : vector<1xf32> to vector<1x1xf32>
    %140 = arith.mulf %139, %131 : vector<1x1xf32>
    %141 = vector.extract_strided_slice %132 {offsets = [0, 0], sizes = [1, 8], strides = [1, 1]} : vector<4x8xf32> to vector<1x8xf32>
    %142 = vector.extract_strided_slice %132 {offsets = [2, 0], sizes = [1, 8], strides = [1, 1]} : vector<4x8xf32> to vector<1x8xf32>
    %cst_57 = arith.constant 5.000000e-01 : f32
    %143 = vector.broadcast %cst_57 : f32 to vector<1x8xf32>
    %144 = arith.mulf %143, %142 : vector<1x8xf32>
    %145 = arith.subf %141, %144 : vector<1x8xf32>
    %146 = vector.extract_strided_slice %132 {offsets = [1, 0], sizes = [1, 8], strides = [1, 1]} : vector<4x8xf32> to vector<1x8xf32>
    %147 = vector.extract_strided_slice %132 {offsets = [3, 0], sizes = [1, 8], strides = [1, 1]} : vector<4x8xf32> to vector<1x8xf32>
    %cst_58 = arith.constant 5.000000e-01 : f32
    %148 = vector.broadcast %cst_58 : f32 to vector<1x8xf32>
    %149 = arith.mulf %148, %147 : vector<1x8xf32>
    %150 = arith.subf %146, %149 : vector<1x8xf32>
    %151 = vector.extract_strided_slice %132 {offsets = [0, 0], sizes = [1, 8], strides = [1, 1]} : vector<4x8xf32> to vector<1x8xf32>
    %152 = vector.extract_strided_slice %132 {offsets = [2, 0], sizes = [1, 8], strides = [1, 1]} : vector<4x8xf32> to vector<1x8xf32>
    %cst_59 = arith.constant 5.000000e-01 : f32
    %153 = vector.broadcast %cst_59 : f32 to vector<1x8xf32>
    %154 = arith.mulf %153, %152 : vector<1x8xf32>
    %155 = arith.addf %151, %154 : vector<1x8xf32>
    %156 = vector.extract_strided_slice %132 {offsets = [1, 0], sizes = [1, 8], strides = [1, 1]} : vector<4x8xf32> to vector<1x8xf32>
    %157 = vector.extract_strided_slice %132 {offsets = [3, 0], sizes = [1, 8], strides = [1, 1]} : vector<4x8xf32> to vector<1x8xf32>
    %cst_60 = arith.constant 5.000000e-01 : f32
    %158 = vector.broadcast %cst_60 : f32 to vector<1x8xf32>
    %159 = arith.mulf %158, %157 : vector<1x8xf32>
    %160 = arith.addf %156, %159 : vector<1x8xf32>
    %161 = vector.extract_strided_slice %133 {offsets = [0, 0], sizes = [1, 8], strides = [1, 1]} : vector<4x8xf32> to vector<1x8xf32>
    %162 = vector.extract_strided_slice %133 {offsets = [2, 0], sizes = [1, 8], strides = [1, 1]} : vector<4x8xf32> to vector<1x8xf32>
    %cst_61 = arith.constant 5.000000e-01 : f32
    %163 = vector.broadcast %cst_61 : f32 to vector<1x8xf32>
    %164 = arith.mulf %163, %162 : vector<1x8xf32>
    %165 = arith.subf %161, %164 : vector<1x8xf32>
    %166 = vector.extract_strided_slice %133 {offsets = [1, 0], sizes = [1, 8], strides = [1, 1]} : vector<4x8xf32> to vector<1x8xf32>
    %167 = vector.extract_strided_slice %133 {offsets = [3, 0], sizes = [1, 8], strides = [1, 1]} : vector<4x8xf32> to vector<1x8xf32>
    %cst_62 = arith.constant 5.000000e-01 : f32
    %168 = vector.broadcast %cst_62 : f32 to vector<1x8xf32>
    %169 = arith.mulf %168, %167 : vector<1x8xf32>
    %170 = arith.subf %166, %169 : vector<1x8xf32>
    %171 = vector.extract_strided_slice %133 {offsets = [0, 0], sizes = [1, 8], strides = [1, 1]} : vector<4x8xf32> to vector<1x8xf32>
    %172 = vector.extract_strided_slice %133 {offsets = [2, 0], sizes = [1, 8], strides = [1, 1]} : vector<4x8xf32> to vector<1x8xf32>
    %cst_63 = arith.constant 5.000000e-01 : f32
    %173 = vector.broadcast %cst_63 : f32 to vector<1x8xf32>
    %174 = arith.mulf %173, %172 : vector<1x8xf32>
    %175 = arith.addf %171, %174 : vector<1x8xf32>
    %176 = vector.extract_strided_slice %133 {offsets = [1, 0], sizes = [1, 8], strides = [1, 1]} : vector<4x8xf32> to vector<1x8xf32>
    %177 = vector.extract_strided_slice %133 {offsets = [3, 0], sizes = [1, 8], strides = [1, 1]} : vector<4x8xf32> to vector<1x8xf32>
    %cst_64 = arith.constant 5.000000e-01 : f32
    %178 = vector.broadcast %cst_64 : f32 to vector<1x8xf32>
    %179 = arith.mulf %178, %177 : vector<1x8xf32>
    %180 = arith.addf %176, %179 : vector<1x8xf32>
    %181 = arith.subf %155, %145 : vector<1x8xf32>
    %182 = arith.subf %160, %150 : vector<1x8xf32>
    %183 = arith.mulf %181, %182 : vector<1x8xf32>
    %184 = arith.subf %175, %165 : vector<1x8xf32>
    %185 = arith.subf %180, %170 : vector<1x8xf32>
    %186 = arith.mulf %184, %185 : vector<1x8xf32>
    %187 = arith.minimumf %155, %175 : vector<1x8xf32>
    %188 = arith.maximumf %145, %165 : vector<1x8xf32>
    %189 = arith.subf %187, %188 : vector<1x8xf32>
    %cst_65 = arith.constant 0.000000e+00 : f32
    %190 = vector.broadcast %cst_65 : f32 to vector<1x8xf32>
    %191 = arith.maximumf %189, %190 : vector<1x8xf32>
    %192 = arith.minimumf %160, %180 : vector<1x8xf32>
    %193 = arith.maximumf %150, %170 : vector<1x8xf32>
    %194 = arith.subf %192, %193 : vector<1x8xf32>
    %cst_66 = arith.constant 0.000000e+00 : f32
    %195 = vector.broadcast %cst_66 : f32 to vector<1x8xf32>
    %196 = arith.maximumf %194, %195 : vector<1x8xf32>
    %197 = arith.mulf %191, %196 : vector<1x8xf32>
    %198 = arith.addf %183, %186 : vector<1x8xf32>
    %199 = arith.subf %198, %197 : vector<1x8xf32>
    %200 = tpu.reciprocal %199 {approx = true} : vector<1x8xf32> -> vector<1x8xf32>
    %201 = arith.mulf %197, %200 : vector<1x8xf32>
    %202 = arith.maximumf %155, %175 : vector<1x8xf32>
    %203 = arith.minimumf %145, %165 : vector<1x8xf32>
    %204 = arith.subf %202, %203 : vector<1x8xf32>
    %205 = arith.maximumf %160, %180 : vector<1x8xf32>
    %206 = arith.minimumf %150, %170 : vector<1x8xf32>
    %207 = arith.subf %205, %206 : vector<1x8xf32>
    %208 = arith.mulf %204, %207 : vector<1x8xf32>
    %209 = arith.subf %208, %199 : vector<1x8xf32>
    %210 = tpu.reciprocal %208 {approx = true} : vector<1x8xf32> -> vector<1x8xf32>
    %211 = arith.mulf %209, %210 : vector<1x8xf32>
    %212 = arith.subf %201, %211 : vector<1x8xf32>
    %cst_67 = arith.constant 1.000000e+00 : f32
    %213 = vector.broadcast %cst_67 : f32 to vector<1x8xf32>
    %214 = arith.subf %213, %212 : vector<1x8xf32>
    %cst_68 = arith.constant dense<0.000000e+00> : vector<1xf32>
    %215 = vector.multi_reduction <add>, %214, %cst_68 [1] : vector<1x8xf32> to vector<1xf32>
    %216 = vector.shape_cast %215 : vector<1xf32> to vector<1x1xf32>
    %217 = arith.mulf %216, %131 : vector<1x1xf32>
    %218 = tpu.iota {dimensions = array<i32: 1>} : vector<1x8xi32>
    %c0_i32 = arith.constant 0 : i32
    %219 = vector.broadcast %c0_i32 : i32 to vector<1x8xi32>
    %220 = arith.cmpi eq, %218, %219 : vector<1x8xi32>
    %cst_69 = arith.constant 0.000000e+00 : f32
    %221 = vector.shape_cast %106 : vector<1x1xf32> to vector<1x1xf32>
    %222 = vector.broadcast %221 : vector<1x1xf32> to vector<1x8xf32>
    %223 = vector.broadcast %cst_69 : f32 to vector<1x8xf32>
    %224 = arith.select %220, %222, %223 : vector<1x8xi1>, vector<1x8xf32>
    %c1_i32 = arith.constant 1 : i32
    %225 = vector.broadcast %c1_i32 : i32 to vector<1x8xi32>
    %226 = arith.cmpi eq, %218, %225 : vector<1x8xi32>
    %cst_70 = arith.constant 0.000000e+00 : f32
    %227 = vector.shape_cast %129 : vector<1x1xf32> to vector<1x1xf32>
    %228 = vector.broadcast %227 : vector<1x1xf32> to vector<1x8xf32>
    %229 = vector.broadcast %cst_70 : f32 to vector<1x8xf32>
    %230 = arith.select %226, %228, %229 : vector<1x8xi1>, vector<1x8xf32>
    %231 = arith.addf %224, %230 : vector<1x8xf32>
    %c2_i32 = arith.constant 2 : i32
    %232 = vector.broadcast %c2_i32 : i32 to vector<1x8xi32>
    %233 = arith.cmpi eq, %218, %232 : vector<1x8xi32>
    %cst_71 = arith.constant 0.000000e+00 : f32
    %234 = vector.shape_cast %108 : vector<1x1xf32> to vector<1x1xf32>
    %235 = vector.broadcast %234 : vector<1x1xf32> to vector<1x8xf32>
    %236 = vector.broadcast %cst_71 : f32 to vector<1x8xf32>
    %237 = arith.select %233, %235, %236 : vector<1x8xi1>, vector<1x8xf32>
    %238 = arith.addf %231, %237 : vector<1x8xf32>
    %c3_i32 = arith.constant 3 : i32
    %239 = vector.broadcast %c3_i32 : i32 to vector<1x8xi32>
    %240 = arith.cmpi eq, %218, %239 : vector<1x8xi32>
    %cst_72 = arith.constant 0.000000e+00 : f32
    %241 = vector.shape_cast %140 : vector<1x1xf32> to vector<1x1xf32>
    %242 = vector.broadcast %241 : vector<1x1xf32> to vector<1x8xf32>
    %243 = vector.broadcast %cst_72 : f32 to vector<1x8xf32>
    %244 = arith.select %240, %242, %243 : vector<1x8xi1>, vector<1x8xf32>
    %245 = arith.addf %238, %244 : vector<1x8xf32>
    %c4_i32_73 = arith.constant 4 : i32
    %246 = vector.broadcast %c4_i32_73 : i32 to vector<1x8xi32>
    %247 = arith.cmpi eq, %218, %246 : vector<1x8xi32>
    %cst_74 = arith.constant 0.000000e+00 : f32
    %248 = vector.shape_cast %217 : vector<1x1xf32> to vector<1x1xf32>
    %249 = vector.broadcast %248 : vector<1x1xf32> to vector<1x8xf32>
    %250 = vector.broadcast %cst_74 : f32 to vector<1x8xf32>
    %251 = arith.select %247, %249, %250 : vector<1x8xi1>, vector<1x8xf32>
    %252 = arith.addf %245, %251 : vector<1x8xf32>
    %c0_75 = arith.constant 0 : index
    %c0_76 = arith.constant 0 : index
    %253 = vector.load %arg8[%c0_75, %c0_76] : memref<1x8xf32, #tpu.memory_space<vmem>>, vector<1x8xf32>
    tpu.vector_store %arg8[%c0_75, %c0_76], %252 {strides = array<i32>} : memref<1x8xf32, #tpu.memory_space<vmem>>, vector<1x8xf32>,
    return
  }
}

</mosaic_0001>

<bundles_post_ra>
// kernel: custom-call.7
= control target key start
LH: loop header
LB: loop body
LE: loop exit
PB: predicated region body
PF: predicated region fallthrough
CT: control target
= control target key end

     0   :  { %s6_s0 = inlined_call_operand.vmem [shape: s32[2,4], index: 0, kind: output, shape index: {}]  }

// kernel: custom-call.6
= control target key start
LH: loop header
LB: loop body
LE: loop exit
PB: predicated region body
PF: predicated region fallthrough
CT: control target
= control target key end

     0   :  { %s6_s0 = inlined_call_operand.vmem [shape: pred[2,128], index: 0, kind: output, shape index: {}]  }

// kernel: _forward_impl.2
= control target key start
LH: loop header
LB: loop body
LE: loop exit
PB: predicated region body
PF: predicated region fallthrough
CT: control target
= control target key end

     0   :  { %vm18_vm0 = vcmask 1044480   ;;  %v587_v2 = vmov 0   ;;  %s588_s26 = smov 126   ;;  %v589_v17 = vmov 1   ;;  %v590_v28 = vmov 0.0   ;;  %s744_s3 = inlined_call_operand.vmem [shape: f32[2,4,4], index: 3, kind: input, shape index: {}]   ;;  %s745_s2 = inlined_call_operand.vmem [shape: s32[2,4,1], index: 2, kind: input, shape index: {}]   ;;  %s746_s0 = inlined_call_operand.vmem [shape: f32[2,5,128], index: 0, kind: input, shape index: {}]   ;;  %s747_s1 = inlined_call_operand.vmem [shape: f32[2,4,128], index: 1, kind: input, shape index: {}]   ;;  %s748_s4 = inlined_call_operand.vmem [shape: f32[2,4,128], index: 4, kind: output, shape index: {}]  }
   0x1   :  { %v623_v0 = vld [vmem:[%s744_s3] sm:$0xf]  ;;  %v628_v1 = vld [vmem:[%s744_s3 + $0x4] sm:$0xf]  ;;  %557 = vset.pattern.permute.xlu0 %v587_v2  ;;  %558 = vset.pattern.permute.xlu1 %v587_v2  ;;  %v527_v8 = vld [vmem:[%s746_s0 + $0x8] sm:$0x1f]  ;;  %v39_v54 = vlaneseq }
   0x2   :  { %v38_v3 = vld [vmem:[%s745_s2] sm:$0xf]  ;;  %v177_v4 = vmul.f32 0.5, %v623_v0  ;;  %v528_v6 = vld [vmem:[%s745_s2 + $0x4] sm:$0xf]  ;;  %v428_v9 = vmul.f32 0.5, %v628_v1  ;;  %539 = vmatprep.subr.mxu0 %v590_v28  ;;  %544 = vmatprep.subr.mxu1 %v590_v28 }
   0x3   :  { %42 = vperm.xlu0 %557, %v38_v3   ;;  %v17_v5 = vld [vmem:[%s746_s0] sm:$0x1f]  ;;  %v270_v11 = vsel %vm18_vm0, %v527_v8, -inf  ;;  %vm591_vm1 = vmmov 0   ;;  %s592_s0 = smov 127   ;;  %v40_v58 = vand.u32 127, %v39_v54 }
   0x4   :  { %v19_v7 = vsel %vm18_vm0, %v17_v5, -inf  ;;  %179 = vrot.lane.b32.xlu1 %v177_v4, %s588_s26  ;;  %v271_v12 = vrot.slane %v270_v11, 4  ;;  %541 = vmatprep.mubr.msk.f32.mxu0 %vm591_vm1, %v590_v28  ;;  %vm47_vm2 = vcmask 39936  }
   0x5   :  { %v20_v10 = vrot.slane %v19_v7, 4  ;;  %546 = vmatprep.mubr.msk.f32.mxu1 %vm591_vm1, %v590_v28 }
   0x6   :  { %v272_v14 = vmax.f32 %v270_v11, %v271_v12  ;;  %v684_v11 = vld [vmem:[%s747_s1 + $0x4] sm:$0xf] }
   0x7   :  { %292 = vperm.xlu0 %557, %v528_v6   ;;  %v21_v13 = vmax.f32 %v19_v7, %v20_v10  ;;  %v593_v6 = vmov 2   ;;  %v594_v7 = vmov 3  }
   0x8   :  { %430 = vrot.lane.b32.xlu1 %v428_v9, %s588_s26  ;;  %v273_v16 = vrot.slane %v272_v14, 2  ;;  %v677_v9 = vld [vmem:[%s747_s1] sm:$0xf] }
   0x9   :  { %v22_v15 = vrot.slane %v21_v13, 2 }
   0xa   :  { %v274_v19 = vmax.f32 %v272_v14, %v273_v16 }
   0xb   :  { %559 = vset.pattern.permute.xlu0 %v589_v17  ;;  %v23_v18 = vmax.f32 %v21_v13, %v22_v15  ;;  %v692_v15 = vshrl.u32 %v39_v54, 7 }
   0xc   :  { %v275_v21 = vrot.slane %v274_v19, 1 }
   0xd   :  { %v24_v20 = vrot.slane %v23_v18, 1 }
   0xe   :  { %v276_v23 = vmax.f32 %v274_v19, %v275_v21  ;;  %v700_v21 = vsub.s32 1, %v692_v15 }
   0xf   :  { %v25_v22 = vmax.f32 %v23_v18, %v24_v20  ;;  %v697_v20 = vsub.s32 0, %v692_v15 }
  0x10   :  { %v277_v25 = vsub.f32 %v527_v8, %v276_v23 }
  0x11   :  { %v26_v24 = vsub.f32 %v17_v5, %v25_v22 }
  0x12   :  { %v278_v27 = vmul.f32 1.442695, %v277_v25 }
  0x13   :  { %v27_v26 = vmul.f32 1.442695, %v26_v24 }
  0x15   :  { %571 = vpow2.f32 %v27_v26 }
  0x16   :  { %573 = vpow2.f32 %v278_v27 }
  0x1f   :  { %v572_v29 = vpop.eup %571 }
  0x20   :  { %v574_v30 = vpop.eup %573  ;;  %v29_v31 = vsel %vm18_vm0, %v572_v29, 0.0 }
  0x21   :  { %v30_v32 = vrot.slane %v29_v31, 4  ;;  %v280_v33 = vsel %vm18_vm0, %v574_v30, 0.0 }
  0x22   :  { %v281_v34 = vrot.slane %v280_v33, 4 }
  0x23   :  { %v31_v35 = vadd.f32 %v30_v32, %v29_v31 }
  0x24   :  { %v282_v36 = vadd.f32 %v281_v34, %v280_v33 }
  0x25   :  { %v32_v37 = vrot.slane %v31_v35, 2 }
  0x26   :  { %v283_v38 = vrot.slane %v282_v36, 2 }
  0x27   :  { %v33_v39 = vadd.f32 %v32_v37, %v31_v35 }
  0x28   :  { %v284_v40 = vadd.f32 %v283_v38, %v282_v36 }
  0x29   :  { %v34_v41 = vrot.slane %v33_v39, 1 }
  0x2a   :  { %v285_v42 = vrot.slane %v284_v40, 1 }
  0x2b   :  { %v35_v43 = vadd.f32 %v34_v41, %v33_v39 }
  0x2c   :  { %v286_v44 = vadd.f32 %v285_v42, %v284_v40 }
  0x2d   :  { %575 = vrcp.f32 %v35_v43 }
  0x2e   :  { %577 = vrcp.f32 %v286_v44 }
  0x37   :  { %v576_v45 = vpop.eup %575 }
  0x38   :  { %v578_v46 = vpop.eup %577  ;;  %v37_v47 = vmul.f32 %v576_v45, %v572_v29 }
  0x39   :  { %v288_v48 = vmul.f32 %v578_v46, %v574_v30 }
  0x3a   :  { %540 = vmatpush3.msk.msra.mxu0 %vm18_vm0, %v37_v47 }
  0x3b   :  { %545 = vmatpush3.msk.msra.mxu1 %vm18_vm0, %v288_v48 }
  0x76   :  { %v180_v49 = vpop.permute.xlu1 %179 }
  0x77   :  { %v182_v50 = vsub.f32 %v623_v0, %v180_v49  ;;  %v183_v51 = vadd.f32 %v180_v49, %v623_v0 }
  0x79   :  { %v189_v52 = vsub.f32 %v183_v51, %v182_v50 }
  0x7a   :  { %v431_v53 = vpop.permute.xlu1 %430 }
  0x7b   :  { %v433_v55 = vsub.f32 %v628_v1, %v431_v53  ;;  %v434_v56 = vadd.f32 %v628_v1, %v431_v53  ;;  %191 = vrot.lane.b32.xlu0 %v189_v52, %s592_s0 }
  0x7d   :  { %v440_v57 = vsub.f32 %v434_v56, %v433_v55 }
  0x7f   :  { %442 = vrot.lane.b32.xlu1 %v440_v57, %s592_s0  ;;  %222 = vperm.xlu0 %559, %v183_v51  }
  0x82   :  { %v43_v59 = vpop.permute.xlu0 %42 }
  0x83   :  { %vm44_vm3 = vcmp.eq.s32.totalorder %v40_v58, %v43_v59  ;;  %211 = vperm.xlu1 %558, %v182_v50   ;;  %560 = vset.pattern.permute.xlu0 %v587_v2 }
  0x84   :  { %v524_v60 = vsel %vm44_vm3, 1.0, %v590_v28  ;;  %201 = vperm.xlu0 %560, %v183_v51  }
  0x85   :  { %542 = vmatmul.mubr.msk.f32.vlgmr.msra.gmra.mrb[0].mxu0 %vm47_vm2, %v524_v60 }
  0x86   :  { %v293_v61 = vpop.permute.xlu0 %292 }
  0x87   :  { %vm294_vm4 = vcmp.eq.s32.totalorder %v40_v58, %v293_v61  ;;  %561 = vset.pattern.permute.xlu1 %v589_v17 }
  0x88   :  { %v529_v62 = vsel %vm294_vm4, 1.0, %v590_v28  ;;  %231 = vperm.xlu1 %561, %v182_v50   ;;  %462 = vperm.xlu0 %560, %v433_v55  }
  0x89   :  { %547 = vmatmul.mubr.msk.f32.vlgmr.msra.gmra.mrb[0].mxu1 %vm47_vm2, %v529_v62 }
  0x8c   :  { %562 = vset.pattern.permute.xlu1 %v587_v2  ;;  %129 = vperm.xlu0 %560, %v623_v0  }
  0x8d   :  { %452 = vperm.xlu1 %562, %v434_v56  }
  0x91   :  { %563 = vset.pattern.permute.xlu1 %v589_v17 }
  0x92   :  { %473 = vperm.xlu1 %563, %v434_v56  }
  0x96   :  { %482 = vperm.xlu1 %563, %v433_v55  }
  0x9a   :  { %564 = vset.pattern.permute.xlu1 %v587_v2 }
  0xed   :  { %v192_v63 = vpop.permute.xlu0 %191 }
  0xee   :  { %v194_v3 = vmul.f32 %v192_v63, %v189_v52 }
  0xf0   :  { %244 = vperm.xlu0 %560, %v194_v3  }
  0xf1   :  { %v443_v4 = vpop.permute.xlu1 %442 }
  0xf2   :  { %v445_v5 = vmul.f32 %v443_v4, %v440_v57 }
  0xf4   :  { %495 = vperm.xlu1 %564, %v445_v5   ;;  %380 = vperm.xlu0 %560, %v628_v1  }
  0xf8   :  { %565 = vset.pattern.permute.xlu1 %v589_v17  ;;  %566 = vset.pattern.permute.xlu0 %v593_v6 }
  0xf9   :  { %139 = vperm.xlu1 %565, %v623_v0   ;;  %150 = vperm.xlu0 %566, %v623_v0  }
  0xfd   :  { %390 = vperm.xlu1 %565, %v628_v1   ;;  %569 = vset.pattern.permute.xlu0 %v594_v7 }
  0xfe   :  { %412 = vperm.xlu0 %569, %v628_v1   ;;  %v690_v13 = vpop.permute.xlu0 %222 }
 0x101   :  { %567 = vset.pattern.permute.xlu1 %v593_v6 }
 0x102   :  { %401 = vperm.xlu1 %567, %v628_v1   ;;  %570 = vset.pattern.permute.xlu0 %v587_v2  ;;  %v672_v8 = vpop.permute.xlu1 %211  ;;  %v171_v1 = vmul.f32 0.5, %v677_v9 }
 0x103   :  { %v202_v24 = vpop.permute.xlu0 %201 }
 0x104   :  { %v173_v16 = vrot.slane %v171_v1, 2 }
 0x106   :  { %568 = vset.pattern.permute.xlu1 %v594_v7  ;;  %v176_v22 = vadd.f32 %v173_v16, %v677_v9  ;;  %v175_v23 = vsub.f32 %v677_v9, %v173_v16 }
 0x107   :  { %161 = vperm.xlu1 %568, %v623_v0   ;;  %v679_v10 = vpop.permute.xlu1 %231  ;;  %v422_v0 = vmul.f32 0.5, %v684_v11  ;;  %v463_v37 = vpop.permute.xlu0 %462 }
 0x108   :  { %v229_v26 = vrot.slane %v175_v23, %v700_v21  ;;  %v184_v29 = vsub.f32 %v176_v22, %v175_v23  ;;  %v220_v30 = vrot.slane %v176_v22, %v700_v21  ;;  %v208_v31 = vrot.slane %v175_v23, %v697_v20 }
 0x109   :  { %v424_v17 = vrot.slane %v422_v0, 2  ;;  %v198_v32 = vrot.slane %v176_v22, %v697_v20 }
 0x10a   :  { %v234_v34 = vmax.f32 %v229_v26, %v679_v10  ;;  %v186_v36 = vrot.slane %v184_v29, 1  ;;  %v225_v41 = vmin.f32 %v220_v30, %v690_v13  ;;  %v214_v42 = vmax.f32 %v208_v31, %v672_v8 }
 0x10b   :  { %v426_v27 = vsub.f32 %v684_v11, %v424_v17  ;;  %v427_v28 = vadd.f32 %v684_v11, %v424_v17  ;;  %v204_v43 = vmin.f32 %v198_v32, %v202_v24  ;;  %v130_v49 = vpop.permute.xlu0 %129  ;;  %v255_v62 = vmin.f32 %v229_v26, %v679_v10 }
 0x10c   :  { %v453_v14 = vpop.permute.xlu1 %452  ;;  %v235_v45 = vsub.f32 %v225_v41, %v234_v34  ;;  %v188_v48 = vmul.f32 %v186_v36, %v184_v29  ;;  %v254_v4 = vmax.f32 %v220_v30, %v690_v13  ;;  %v252_v5 = vmin.f32 %v208_v31, %v672_v8 }
 0x10d   :  { %v435_v33 = vsub.f32 %v427_v28, %v426_v27  ;;  %v480_v35 = vrot.slane %v426_v27, %v700_v21  ;;  %v449_v38 = vrot.slane %v427_v28, %v697_v20  ;;  %v471_v39 = vrot.slane %v427_v28, %v700_v21 }
 0x10e   :  { %v459_v46 = vrot.slane %v426_v27, %v697_v20  ;;  %v215_v50 = vsub.f32 %v204_v43, %v214_v42  ;;  %v236_v55 = vmax.f32 %v235_v45, 0.0  ;;  %v241_v58 = vrot.slane %v188_v48, %v697_v20 }
 0x10f   :  { %v437_v44 = vrot.slane %v435_v33, 1  ;;  %v455_v51 = vmin.f32 %v449_v38, %v453_v14  ;;  %v502_v59 = vmax.f32 %v449_v38, %v453_v14  ;;  %v251_v0 = vmax.f32 %v198_v32, %v202_v24 }
 0x110   :  { %v465_v56 = vmax.f32 %v459_v46, %v463_v37  ;;  %v216_v61 = vmax.f32 %v215_v50, 0.0  ;;  %v503_v6 = vmin.f32 %v459_v46, %v463_v37  ;;  %v256_v14 = vsub.f32 %v254_v4, %v255_v62 }
 0x111   :  { %v474_v25 = vpop.permute.xlu1 %473  ;;  %v439_v53 = vmul.f32 %v437_v44, %v435_v33  ;;  %v253_v26 = vsub.f32 %v251_v0, %v252_v5  ;;  %v166_v24 = vsub.s32 3, %v692_v15  ;;  %v145_v31 = vrot.slane %v677_v9, %v700_v21 }
 0x112   :  { %v476_v52 = vmin.f32 %v471_v39, %v474_v25  ;;  %v505_v60 = vmax.f32 %v471_v39, %v474_v25  ;;  %v466_v63 = vsub.f32 %v455_v51, %v465_v56  ;;  %v237_v16 = vmul.f32 %v236_v55, %v216_v61 }
 0x113   :  { %v492_v3 = vrot.slane %v439_v53, %v697_v20  ;;  %v257_v13 = vmul.f32 %v256_v14, %v253_v26  ;;  %v155_v32 = vsub.s32 2, %v692_v15  ;;  %v396_v34 = vrot.slane %v684_v11, %v700_v21 }
 0x114   :  { %v467_v22 = vmax.f32 %v466_v63, 0.0  ;;  %v135_v36 = vrot.slane %v677_v9, %v697_v20  ;;  %v418_v38 = vrot.slane %v684_v11, %v166_v24  ;;  %v167_v56 = vrot.slane %v677_v9, %v166_v24 }
 0x115   :  { %v483_v40 = vpop.permute.xlu1 %482  ;;  %v407_v43 = vrot.slane %v684_v11, %v155_v32 }
 0x116   :  { %v485_v47 = vmax.f32 %v480_v35, %v483_v40  ;;  %v506_v54 = vmin.f32 %v480_v35, %v483_v40  ;;  %v386_v35 = vrot.slane %v684_v11, %v697_v20  ;;  %v156_v40 = vrot.slane %v677_v9, %v155_v32 }
 0x117   :  { %v136_v44 = vsub.f32 %v130_v49, %v135_v36 }
 0x118   :  { %v486_v57 = vsub.f32 %v476_v52, %v485_v47  ;;  %v507_v7 = vsub.f32 %v505_v60, %v506_v54 }
 0x158   :  { %v687_v2 = vpop.f32.mrb[0].mxu0 }
 0x159   :  { %v543_v12 = vpop.f32.mrb[1].mxu0 }
 0x15a   :  { %v487_v12 = vmax.f32 %v486_v57, 0.0  ;;  %v137_v57 = vand.u32 2147483647, %v136_v44 }
 0x15c   :  { %v694_v18 = vpop.f32.mrb[0].mxu1  ;;  %v488_v27 = vmul.f32 %v487_v12, %v467_v22 }
 0x15d   :  { %v548_v19 = vpop.f32.mrb[1].mxu1 }
 0x15e   :  { %v504_v19 = vsub.f32 %v502_v59, %v503_v6 }
 0x160   :  { %v508_v25 = vmul.f32 %v507_v7, %v504_v19 }
 0x16f   :  { %v245_v1 = vpop.permute.xlu0 %244 }
 0x170   :  { %v247_v17 = vadd.f32 %v245_v1, %v241_v58 }
 0x172   :  { %v248_v23 = vsub.f32 %v247_v17, %v237_v16  ;;  %v373_v17 = vsub.f32 0.0, %v694_v18 }
 0x173   :  { %v496_v10 = vpop.permute.xlu1 %495  ;;  %v381_v29 = vpop.permute.xlu0 %380 }
 0x174   :  { %v498_v28 = vadd.f32 %v496_v10, %v492_v3  ;;  %579 = vrcp.f32 %v248_v23  ;;  %v387_v15 = vsub.f32 %v381_v29, %v386_v35  ;;  %v258_v50 = vsub.f32 %v257_v13, %v248_v23 }
 0x175   :  { %581 = vrcp.f32 %v508_v25 }
 0x176   :  { %v499_v8 = vsub.f32 %v498_v28, %v488_v27  ;;  %v388_v54 = vand.u32 2147483647, %v387_v15 }
 0x178   :  { %583 = vrcp.f32 %v499_v8  ;;  %v140_v30 = vpop.permute.xlu1 %139  ;;  %v151_v33 = vpop.permute.xlu0 %150  ;;  %v509_v21 = vsub.f32 %v508_v25, %v499_v8 }
 0x179   :  { %585 = vrcp.f32 %v257_v13  ;;  %v146_v39 = vsub.f32 %v140_v30, %v145_v31  ;;  %v157_v20 = vsub.f32 %v151_v33, %v156_v40 }
 0x17b   :  { %v147_v51 = vand.u32 2147483647, %v146_v39  ;;  %v158_v4 = vand.u32 2147483647, %v157_v20 }
 0x17c   :  { %v391_v37 = vpop.permute.xlu1 %390 }
 0x17d   :  { %v397_v41 = vsub.f32 %v391_v37, %v396_v34  ;;  %v413_v42 = vpop.permute.xlu0 %412  ;;  %v148_v3 = vadd.f32 %v147_v51, %v137_v57 }
 0x17e   :  { %v580_v45 = vpop.eup %579  ;;  %v419_v47 = vsub.f32 %v413_v42, %v418_v38 }
 0x17f   :  { %v398_v46 = vand.u32 2147483647, %v397_v41  ;;  %v582_v48 = vpop.eup %581  ;;  %v250_v58 = vmul.f32 %v580_v45, %v237_v16  ;;  %v159_v19 = vadd.f32 %v158_v4, %v148_v3 }
 0x180   :  { %v511_v60 = vmul.f32 %v582_v48, %v509_v21  ;;  %v420_v62 = vand.u32 2147483647, %v419_v47 }
 0x181   :  { %v402_v52 = vpop.permute.xlu1 %401  ;;  %v399_v49 = vadd.f32 %v398_v46, %v388_v54 }
 0x182   :  { %v584_v53 = vpop.eup %583  ;;  %v408_v55 = vsub.f32 %v402_v52, %v407_v43 }
 0x183   :  { %v501_v59 = vmul.f32 %v584_v53, %v488_v27  ;;  %v586_v11 = vpop.eup %585  ;;  %v124_v27 = vsub.f32 0.0, %v687_v2 }
 0x184   :  { %v409_v61 = vand.u32 2147483647, %v408_v55  ;;  %v260_v63 = vmul.f32 %v586_v11, %v258_v50 }
 0x185   :  { %v512_v5 = vsub.f32 %v501_v59, %v511_v60 }
 0x186   :  { %v410_v6 = vadd.f32 %v409_v61, %v399_v49  ;;  %v162_v7 = vpop.permute.xlu1 %161  ;;  %v261_v0 = vsub.f32 %v250_v58, %v260_v63 }
 0x187   :  { %v168_v1 = vsub.f32 %v162_v7, %v167_v56  ;;  %v515_v9 = vsub.f32 0.0, %v512_v5 }
 0x188   :  { %v421_v12 = vadd.f32 %v420_v62, %v410_v6  ;;  %v264_v23 = vsub.f32 0.0, %v261_v0 }
 0x189   :  { %v169_v16 = vand.u32 2147483647, %v168_v1  ;;  %v516_v10 = vmul.f32 2.0, %v515_v9 }
 0x18a   :  { %v513_v14 = vmul.f32 5.0, %v421_v12  ;;  %v265_v13 = vmul.f32 2.0, %v264_v23 }
 0x18b   :  { %v170_v22 = vadd.f32 %v169_v16, %v159_v19 }
 0x18c   :  { %v514_v25 = vadd.f32 %v513_v14, %v373_v17 }
 0x18d   :  { %v262_v26 = vmul.f32 5.0, %v170_v22 }
 0x18e   :  { %v517_v28 = vadd.f32 %v516_v10, %v514_v25 }
 0x18f   :  { %v263_v29 = vadd.f32 %v262_v26, %v124_v27 }
 0x190   :  { %534 = vst [vmem:[%s748_s4 + $0x4] sm:$0xf] %v517_v28 }
 0x191   :  { %v266_v8 = vadd.f32 %v265_v13, %v263_v29 }
 0x193   :  { %267 = vst [vmem:[%s748_s4] sm:$0xf] %v266_v8 }

// kernel: _forward_impl.3
= control target key start
LH: loop header
LB: loop body
LE: loop exit
PB: predicated region body
PF: predicated region fallthrough
CT: control target
= control target key end

     0   :  { %vm33_vm0 = vcmask 126976   ;;  %vm85_vm1 = vcmask 125952   ;;  %vm229_vm2 = vcmask 60416   ;;  %vm96_vm3 = vcmask 126980   ;;  %s521_s0 = inlined_call_operand.vmem [shape: f32[2,5,16], index: 0, kind: input, shape index: {}]   ;;  %s522_s3 = inlined_call_operand.vmem [shape: f32[4,8], index: 3, kind: input, shape index: {}]   ;;  %s523_s4 = inlined_call_operand.vmem [shape: f32[4,8], index: 4, kind: input, shape index: {}]   ;;  %s524_s6 = inlined_call_operand.vmem [shape: s32[1,8], index: 6, kind: input, shape index: {}]   ;;  %s525_s1 = inlined_call_operand.vmem [shape: s32[2,1,16], index: 1, kind: input, shape index: {}]   ;;  %s526_s5 = inlined_call_operand.vmem [shape: f32[5,8], index: 5, kind: input, shape index: {}]   ;;  %s527_s7 = inlined_call_operand.<no memory space> [shape: f32[1,1], index: 7, kind: input, shape index: {}]   ;;  %s528_s2 = inlined_call_operand.vmem [shape: f32[2,1,1], index: 2, kind: input, shape index: {}]   ;;  %s529_s8 = inlined_call_operand.vmem [shape: f32[1,8], index: 8, kind: output, shape index: {}]  }
   0x1   :  { %v419_v0 = vld [vmem:[%s521_s0] sm:$0x1f]  ;;  %v424_v1 = vld [vmem:[%s521_s0 + $0x8] sm:$0x1f]  ;;  %v368_v56 = vmov 0.0   ;;  %vm217_vm6 = vcmask 64512  }
   0x2   :  { %v86_v2 = vsel %vm85_vm1, %v419_v0, -inf  ;;  %v34_v3 = vsel %vm33_vm0, %v419_v0, -inf  ;;  %v114_v4 = vsel %vm33_vm0, %v424_v1, -inf  ;;  %v162_v5 = vsel %vm85_vm1, %v424_v1, -inf  ;;  %v225_v6 = vld [vmem:[%s522_s3] sm:$0xf] }
   0x3   :  { %v87_v7 = vrot.slane %v86_v2, 4  ;;  %v35_v8 = vrot.slane %v34_v3, 4  ;;  %v115_v9 = vrot.slane %v114_v4, 4  ;;  %v163_v10 = vrot.slane %v162_v5, 4  ;;  %v226_v11 = vld [vmem:[%s523_s4] sm:$0xf] }
   0x4   :  { %v227_v12 = vsub.f32 %v225_v6, %v226_v11  ;;  %v241_v13 = vmul.f32 0.5, %v225_v6  ;;  %v247_v14 = vmul.f32 0.5, %v226_v11  ;;  %vm76_vm7 = vcmask 122880  }
   0x5   :  { %v88_v15 = vmax.f32 %v86_v2, %v87_v7  ;;  %v36_v16 = vmax.f32 %v34_v3, %v35_v8  ;;  %v438_v17 = vmax.f32 %v114_v4, %v115_v9  ;;  %v164_v18 = vmax.f32 %v162_v5, %v163_v10 }
   0x6   :  { %v228_v19 = vand.u32 2147483647, %v227_v12  ;;  %v243_v20 = vrot.slane %v241_v13, 2  ;;  %v249_v21 = vrot.slane %v247_v14, 2  ;;  %v54_v2 = vlaneseq }
   0x7   :  { %v89_v22 = vrot.slane %v88_v15, 2  ;;  %v37_v23 = vrot.slane %v36_v16, 2  ;;  %v117_v24 = vrot.slane %v438_v17, 2  ;;  %v165_v25 = vrot.slane %v164_v18, 2 }
   0x8   :  { %v230_v26 = vsel %vm229_vm2, %v228_v19, 0.0  ;;  %v245_v27 = vsub.f32 %v225_v6, %v243_v20  ;;  %v246_v28 = vadd.f32 %v243_v20, %v225_v6  ;;  %v251_v29 = vsub.f32 %v226_v11, %v249_v21 }
   0x9   :  { %v90_v30 = vmax.f32 %v88_v15, %v89_v22  ;;  %v38_v31 = vmax.f32 %v36_v16, %v37_v23  ;;  %v166_v32 = vmax.f32 %v164_v18, %v165_v25  ;;  %v231_v33 = vrot.slane %v230_v26, 4  ;;  %v462_v16 = vld [vmem:[%s525_s1] sm:$0x1] }
   0xa   :  { %v252_v34 = vadd.f32 %v249_v21, %v226_v11  ;;  %v253_v35 = vsub.f32 %v246_v28, %v245_v27  ;;  %v264_v36 = vmax.f32 %v245_v27, %v251_v29  ;;  %v276_v37 = vmin.f32 %v245_v27, %v251_v29  ;;  %v344_v11 = vld [vmem:[%s524_s6] ss:$0 sm:$0xff] }
   0xb   :  { %v91_v38 = vrot.slane %v90_v30, 1  ;;  %v39_v39 = vrot.slane %v38_v31, 1  ;;  %v167_v40 = vrot.slane %v166_v32, 1  ;;  %v232_v41 = vadd.f32 %v231_v33, %v230_v26 }
   0xc   :  { %v255_v42 = vrot.slane %v253_v35, 1  ;;  %v258_v43 = vsub.f32 %v252_v34, %v251_v29  ;;  %v263_v44 = vmin.f32 %v246_v28, %v252_v34  ;;  %v275_v45 = vmax.f32 %v246_v28, %v252_v34 }
   0xd   :  { %v92_v46 = vmax.f32 %v90_v30, %v91_v38  ;;  %v441_v47 = vmax.f32 %v38_v31, %v39_v39  ;;  %v168_v48 = vmax.f32 %v166_v32, %v167_v40  ;;  %v233_v49 = vrot.slane %v232_v41, 2 }
   0xe   :  { %v257_v50 = vmul.f32 %v255_v42, %v253_v35  ;;  %v260_v51 = vrot.slane %v258_v43, 1  ;;  %v265_v52 = vsub.f32 %v263_v44, %v264_v36  ;;  %v277_v53 = vsub.f32 %v275_v45, %v276_v37  ;;  %v339_v45 = vld [vmem:[%s525_s1 + $0x1] sm:$0x1] }
   0xf   :  { %vm93_vm4 = vcmp.ge.f32.partialorder %v92_v46, %v419_v0  ;;  %v41_v54 = vsub.f32 %v419_v0, %v441_v47  ;;  %vm169_vm5 = vcmp.ge.f32.partialorder %v168_v48, %v424_v1  ;;  %v234_v55 = vadd.f32 %v233_v49, %v232_v41 }
  0x10   :  { %v336_v57 = vsel %vm93_vm4, 1.0, %v368_v56  ;;  %v341_v58 = vsel %vm169_vm5, 1.0, %v368_v56  ;;  %v262_v59 = vmul.f32 %v260_v51, %v258_v43  ;;  %v266_v60 = vmax.f32 %v265_v52, 0.0 }
  0x11   :  { %v97_v61 = vsel %vm96_vm3, %v336_v57, 0.0  ;;  %v42_v62 = vmul.f32 1.442695, %v41_v54  ;;  %v235_v63 = vrot.slane %v234_v55, 1  ;;  %v279_v5 = vrot.slane %v277_v53, 1 }
  0x12   :  { %98 = vadd.xlane.f32.xlu0 %v97_v61  ;;  %v268_v3 = vrot.slane %v266_v60, 1  ;;  %v271_v4 = vadd.f32 %v262_v59, %v257_v50  ;;  %v172_v6 = vsel %vm96_vm3, %v341_v58, 0.0  ;;  %v118_v10 = vmax.f32 %v438_v17, %v117_v24  ;;  %v189_v17 = vld [vmem:[%s526_s5] sm:$0x1f] }
  0x13   :  { %352 = vpow2.f32 %v42_v62  ;;  %v236_v7 = vadd.f32 %v235_v63, %v234_v55  ;;  %v281_v9 = vmul.f32 %v279_v5, %v277_v53  ;;  %v457_v13 = vshrl.u32 %v54_v2, 7 }
  0x14   :  { %v270_v8 = vmul.f32 %v268_v3, %v266_v60  ;;  %v119_v15 = vrot.slane %v118_v10, 1  ;;  %vm72_vm8 = vcmp.eq.s32.totalorder %v462_v16, 4  ;;  %v369_v19 = vmov 1.0  }
  0x15   :  { %v237_v12 = vsel %vm217_vm6, %v236_v7, 0.0  ;;  %354 = vrcp.f32 %v281_v9  ;;  %vm195_vm9 = vcmp.eq.s32.totalorder %v457_v13, %v344_v11  ;;  %v471_v20 = vsel %vm72_vm8, 0.1, %v369_v19 }
  0x16   :  { %173 = vadd.xlane.f32.xlu0 %v172_v6  ;;  %238 = vadd.xlane.f32.xlu1 %v237_v12  ;;  %v272_v14 = vsub.f32 %v271_v4, %v270_v8  ;;  %v469_v18 = vmax.f32 %v118_v10, %v119_v15  ;;  %v345_v21 = vsel %vm195_vm9, 1.0, %v368_v56  ;;  %vm199_vm10 = vcmask 61440  }
  0x17   :  { %v81_v23 = vsel %vm76_vm7, %v471_v20, 0.0  ;;  %v198_v24 = vmul.f32 %v345_v21, %v189_v17  ;;  %v207_v25 = vsel %vm199_vm10, %v189_v17, -inf  ;;  %v13_v29 = vstv %s527_s7 }
  0x18   :  { %356 = vrcp.f32 %v272_v14  ;;  %v121_v22 = vsub.f32 %v424_v1, %v469_v18  ;;  %v208_v26 = vrot.slane %v207_v25, 4  ;;  %v282_v31 = vsub.f32 %v281_v9, %v272_v14  ;;  %14 = vst [vmem:[#allocation2] sm:$0x1] %v13_v29 }
  0x19   :  { %v200_v28 = vsel %vm199_vm10, %v198_v24, 0.0  ;;  %vm150_vm11 = vcmp.eq.s32.totalorder %v339_v45, 4  ;;  %vm287_vm12 = vcmask 57344   ;;  %v370_v6 = vmov 0  }
  0x1a   :  { %82 = vadd.xlane.f32.xlu0 %v81_v23  ;;  %v122_v27 = vmul.f32 1.442695, %v121_v22  ;;  %v201_v32 = vrot.slane %v200_v28, 4  ;;  %v209_v33 = vmax.f32 %v207_v25, %v208_v26  ;;  %v151_v59 = vsel %vm150_vm11, 0.1, %v369_v19  ;;  %350 = vset.pattern.permute.xlu1 %v370_v6 }
  0x1b   :  { %v158_v4 = vsel %vm76_vm7, %v151_v59, 0.0  ;;  %351 = vset.pattern.permute.xlu0 %v370_v6 }
  0x1c   :  { %358 = vpow2.f32 %v122_v27  ;;  %v202_v36 = vadd.f32 %v201_v32, %v200_v28  ;;  %v210_v37 = vrot.slane %v209_v33, 2 }
  0x1d   :  { %v353_v30 = vpop.eup %352 }
  0x1e   :  { %v44_v34 = vsel %vm33_vm0, %v353_v30, 0.0  ;;  %v203_v41 = vrot.slane %v202_v36, 2  ;;  %v211_v42 = vmax.f32 %v209_v33, %v210_v37 }
  0x1f   :  { %v45_v35 = vrot.slane %v44_v34, 4  ;;  %v355_v38 = vpop.eup %354 }
  0x20   :  { %v284_v39 = vmul.f32 %v355_v38, %v282_v31  ;;  %v204_v48 = vadd.f32 %v203_v41, %v202_v36  ;;  %v212_v49 = vrot.slane %v211_v42, 1 }
  0x21   :  { %v46_v40 = vadd.f32 %v45_v35, %v44_v34 }
  0x22   :  { %v357_v43 = vpop.eup %356  ;;  %v205_v52 = vrot.slane %v204_v48, 1  ;;  %v213_v53 = vmax.f32 %v211_v42, %v212_v49  ;;  %v343_v49 = vld [vmem:[%s528_s2 + $0x1] ss:$0 sm:$0xff] }
  0x23   :  { %v274_v44 = vmul.f32 %v357_v43, %v270_v8  ;;  %v47_v46 = vrot.slane %v46_v40, 2  ;;  %v491_v8 = vsub.s32 0, %v457_v13 }
  0x24   :  { %v206_v57 = vadd.f32 %v205_v52, %v204_v48 }
  0x25   :  { %v285_v50 = vsub.f32 %v274_v44, %v284_v39  ;;  %v48_v51 = vadd.f32 %v47_v46, %v46_v40  ;;  %v59_v12 = vrot.slane %v462_v16, %v491_v8  ;;  %v137_v24 = vrot.slane %v339_v45, %v491_v8  ;;  %v223_v44 = vld [vmem:[#allocation2] sm:$0x1] }
  0x26   :  { %v359_v58 = vpop.eup %358  ;;  %vm214_vm13 = vcmp.ge.f32.partialorder %v206_v57, %v213_v53  ;;  %v337_v45 = vld [vmem:[%s528_s2] ss:$0 sm:$0xff] }
  0x27   :  { %v286_v54 = vsub.f32 1.0, %v285_v50  ;;  %v49_v55 = vrot.slane %v48_v51, 1  ;;  %v124_v61 = vsel %vm33_vm0, %v359_v58, 0.0  ;;  %v346_v3 = vsel %vm214_vm13, 1.0, %v368_v56 }
  0x28   :  { %v125_v63 = vrot.slane %v124_v61, 4  ;;  %v218_v5 = vsel %vm217_vm6, %v346_v3, 0.0  ;;  %vm60_vm14 = vcmp.eq.s32.totalorder %v457_v13, %v59_v12  ;;  %vm138_vm15 = vcmp.eq.s32.totalorder %v457_v13, %v137_v24 }
  0x29   :  { %v288_v60 = vsel %vm287_vm12, %v286_v54, 0.0  ;;  %v50_v62 = vadd.f32 %v49_v55, %v48_v51  ;;  %219 = vadd.xlane.f32.xlu0 %v218_v5  ;;  %v335_v21 = vsel %vm60_vm14, 1.0, %v368_v56 }
  0x2a   :  { %289 = vadd.xlane.f32.xlu1 %v288_v60  ;;  %v126_v7 = vadd.f32 %v125_v63, %v124_v61 }
  0x2b   :  { %360 = vlog2.f32 %v50_v62 }
  0x2c   :  { %v127_v9 = vrot.slane %v126_v7, 2 }
  0x2e   :  { %159 = vadd.xlane.f32.xlu1 %v158_v4  ;;  %v128_v10 = vadd.f32 %v127_v9, %v126_v7 }
  0x30   :  { %v129_v11 = vrot.slane %v128_v10, 1 }
  0x32   :  { %v130_v14 = vadd.f32 %v129_v11, %v128_v10  ;;  %v293_v10 = vand.u32 127, %v54_v2 }
  0x34   :  { %362 = vlog2.f32 %v130_v14  ;;  %vm296_vm1 = vcmp.eq.s32.totalorder %v293_v10, 1  ;;  %vm294_vm2 = vcmp.eq.s32.totalorder %v293_v10, 0  ;;  %vm310_vm3 = vcmp.eq.s32.totalorder %v293_v10, 3 }
  0x35   :  { %v361_v15 = vpop.eup %360  ;;  %364 = vrcp.f32 %v223_v44  ;;  %vm322_vm4 = vcmp.eq.s32.totalorder %v293_v10, 4 }
  0x36   :  { %v52_v17 = vmul.f32 0.6931472, %v361_v15 }
  0x38   :  { %v53_v19 = vadd.f32 %v52_v17, %v441_v47  ;;  %v340_v47 = vsel %vm138_vm15, 1.0, %v368_v56 }
  0x3a   :  { %v63_v22 = vsub.f32 %v419_v0, %v53_v19 }
  0x3c   :  { %v64_v23 = vmul.f32 %v335_v21, %v63_v22 }
  0x3e   :  { %v65_v25 = vsel %vm33_vm0, %v64_v23, 0.0  ;;  %v363_v27 = vpop.eup %362 }
  0x3f   :  { %v66_v26 = vrot.slane %v65_v25, 4  ;;  %v132_v16 = vmul.f32 0.6931472, %v363_v27  ;;  %v365_v48 = vpop.eup %364 }
  0x41   :  { %v67_v28 = vadd.f32 %v66_v26, %v65_v25  ;;  %v133_v29 = vadd.f32 %v132_v16, %v469_v18 }
  0x43   :  { %v68_v30 = vrot.slane %v67_v28, 2  ;;  %v141_v31 = vsub.f32 %v424_v1, %v133_v29 }
  0x45   :  { %v69_v32 = vadd.f32 %v68_v30, %v67_v28  ;;  %v142_v0 = vmul.f32 %v340_v47, %v141_v31 }
  0x47   :  { %v70_v33 = vrot.slane %v69_v32, 1  ;;  %v143_v34 = vsel %vm33_vm0, %v142_v0, 0.0  ;;  %vm299_vm0 = vcmp.eq.s32.totalorder %v293_v10, 2 }
  0x48   :  { %v144_v36 = vrot.slane %v143_v34, 4 }
  0x49   :  { %v71_v35 = vadd.f32 %v70_v33, %v69_v32 }
  0x4a   :  { %v145_v38 = vadd.f32 %v144_v36, %v143_v34 }
  0x4b   :  { %v74_v37 = vsub.f32 0.0, %v71_v35 }
  0x4c   :  { %v146_v13 = vrot.slane %v145_v38, 2 }
  0x4d   :  { %v75_v39 = vmul.f32 %v74_v37, %v471_v20 }
  0x4e   :  { %v147_v18 = vadd.f32 %v146_v13, %v145_v38 }
  0x4f   :  { %v77_v40 = vsel %vm76_vm7, %v75_v39, 0.0 }
  0x50   :  { %78 = vadd.xlane.f32.xlu0 %v77_v40  ;;  %v148_v41 = vrot.slane %v147_v18, 1 }
  0x52   :  { %v149_v56 = vadd.f32 %v148_v41, %v147_v18 }
  0x54   :  { %v152_v42 = vsub.f32 0.0, %v149_v56 }
  0x56   :  { %v153_v1 = vmul.f32 %v152_v42, %v151_v59 }
  0x58   :  { %v154_v43 = vsel %vm76_vm7, %v153_v1, 0.0 }
  0x59   :  { %155 = vadd.xlane.f32.xlu1 %v154_v43 }
  0x9f   :  { %v99_v46 = vpop.xlane.xlu0 %98 }
  0xa0   :  { %v107_v20 = vsub.f32 %v99_v46, %v337_v45 }
  0xa2   :  { %v108_v52 = vand.u32 2147483647, %v107_v20 }
  0xa3   :  { %v174_v50 = vpop.xlane.xlu0 %173  ;;  %v239_v51 = vpop.xlane.xlu1 %238 }
  0xa4   :  { %v183_v53 = vsub.f32 %v174_v50, %v343_v49  ;;  %v240_v54 = vmul.f32 %v365_v48, %v239_v51 }
  0xa6   :  { %v184_v55 = vand.u32 2147483647, %v183_v53  ;;  %313 = vperm.xlu0 %351, %v240_v54  }
  0xa7   :  { %v83_v62 = vpop.xlane.xlu0 %82 }
  0xa8   :  { %v185_v57 = vadd.f32 %v184_v55, %v108_v52 }
  0xaa   :  { %v188_v58 = vmul.f32 0.5, %v185_v57 }
  0xac   :  { %302 = vperm.xlu1 %350, %v188_v58  }
  0xb6   :  { %v220_v3 = vpop.xlane.xlu0 %219 }
  0xb7   :  { %v290_v59 = vpop.xlane.xlu1 %289  ;;  %v221_v6 = vmul.f32 12.5, %v220_v3 }
  0xb8   :  { %v291_v60 = vmul.f32 %v365_v48, %v290_v59 }
  0xb9   :  { %v222_v12 = vsub.f32 100.0, %v221_v6 }
  0xba   :  { %325 = vperm.xlu1 %350, %v291_v60  }
  0xbb   :  { %v160_v61 = vpop.xlane.xlu1 %159  ;;  %v297_v19 = vsel %vm296_vm1, %v222_v12, 0.0 }
  0xbc   :  { %v161_v63 = vadd.f32 %v160_v61, %v83_v62 }
  0xbe   :  { %366 = vrcp.f32 %v161_v63 }
  0xc8   :  { %v367_v9 = vpop.eup %366 }
  0xdd   :  { %v79_v5 = vpop.xlane.xlu0 %78 }
  0xe6   :  { %v156_v4 = vpop.xlane.xlu1 %155 }
  0xe7   :  { %v157_v7 = vadd.f32 %v156_v4, %v79_v5 }
  0xe9   :  { %v187_v14 = vmul.f32 %v367_v9, %v157_v7 }
  0xeb   :  { %v295_v21 = vsel %vm294_vm2, %v187_v14, 0.0 }
  0xec   :  { %v298_v24 = vadd.f32 %v297_v19, %v295_v21 }
 0x125   :  { %v314_v17 = vpop.permute.xlu0 %313 }
 0x126   :  { %v319_v23 = vrot.slane %v314_v17, %v491_v8 }
 0x128   :  { %v320_v26 = vsel %vm310_vm3, %v319_v23, 0.0 }
 0x12b   :  { %v303_v11 = vpop.permute.xlu1 %302 }
 0x12c   :  { %v305_v15 = vsel %vm299_vm0, %v303_v11, 0.0 }
 0x12d   :  { %v307_v22 = vrot.slane %v305_v15, 4 }
 0x12f   :  { %v309_v25 = vadd.f32 %v307_v22, %v298_v24 }
 0x131   :  { %v321_v2 = vadd.f32 %v320_v26, %v309_v25 }
 0x139   :  { %v326_v27 = vpop.permute.xlu1 %325 }
 0x13a   :  { %v328_v16 = vsel %vm322_vm4, %v326_v27, 0.0 }
 0x13b   :  { %v329_v28 = vadd.f32 %v328_v16, %v321_v2 }
 0x13d   :  { %330 = vst.msk [vmem:[%s529_s8] sm:$0x1] %vm287_vm12, %v329_v28 }

</bundles_post_ra>
